<compile_context>
chip_gen: v7x
topology: tpu7x:2x2x1
jax: 0.10.0
libtpu: 0.0.40
codegen_flags: <defaults>
</compile_context>

<pallas_src>
import math

import jax
import jax.numpy as jnp
from jax.experimental import pallas as pl
from jax.experimental.pallas import tpu as pltpu

# ----------------------------- configuration ------------------------------
B_IMG = 2                           # image batch
C_IN = 3                            # PatchEmbedding default in_channels
IMG = 16                            # img_size
PATCH = 8                           # patch_size
EMB = 32                            # emb_size
HEADS = 4                           # num_heads
DH = EMB // HEADS                   # head dim
DEPTH = 2                           # encoder depth (small)
FF = 2048                           # TransformerEncoderLayer default dim_feedforward
N_PATCHES = (IMG // PATCH) ** 2     # 4
SEQ = N_PATCHES + 1                 # 5 tokens (cls + patches)
ROWS = B_IMG * SEQ                  # 10 flattened (image, token) rows
FLAT = SEQ * EMB                    # 160 flattened features per image
PATCH_FEAT = C_IN * PATCH * PATCH   # 192 flattened patch features (c, kh, kw order)
PATCH_IN = 256                      # lane-padded patch-matmul input width
CLS_COL = PATCH_FEAT                # column 192 is the "cls indicator"
KCAT = HEADS * ROWS                 # 40 rows of the head-folded K / V
BBOX_PAD = 128                      # lane-dense padded bbox output width
ATT_SCALE = 1.0 / math.sqrt(DH)


# ---------------------------- in-kernel helpers -----------------------------

def _gelu_exact(x):
    # torch.nn.functional.gelu default: exact erf-based gelu
    return 0.5 * x * (1.0 + jax.lax.erf(x * 0.7071067811865476))


def _layer_norm(x, g, b, eps):
    mean = jnp.mean(x, axis=-1, keepdims=True)
    xc = x - mean
    var = jnp.mean(xc * xc, axis=-1, keepdims=True)   # biased variance (torch LN)
    return xc * jax.lax.rsqrt(var + eps) * g + b


def _bf16(x):
    return x.astype(jnp.bfloat16)


# --------------------------- fused forward kernel ---------------------------

def _vit_fused_kernel(
    # constants (resident across the whole grid)
    patches_ref, wp_ref, posb_ref, hmask_ref, abias_ref, bsum_ref,
    # per-layer stacked weights (leading DEPTH axis indexed by the grid -> pipelined DMA)
    ln1_g, ln1_b, wqkv, bqkv, wo, bo, ln2_g, ln2_b, w1, b1, w2, b2,
    # final LN + MLP head + bbox (resident)
    lnf_g, lnf_b, mw1, mb1, mw2, mb2, wbb, bbb,
    # output + carried activation scratch
    o_ref, x_ref,
):
    l = pl.program_id(0)

    # -------- iteration 0: patch projection + cls token + positions --------
    @pl.when(l == 0)
    def _():
        # Conv2d(kernel=stride=patch) as one matmul; the extra "cls indicator"
        # column of the input selects the (cls - bias) weight row, so a single
        # full-tile store produces cls + patch rows with positions already added.
        x_ref[...] = (
            jnp.dot(patches_ref[...], wp_ref[...], preferred_element_type=jnp.float32)
            + posb_ref[...])

    x = x_ref[...]

    # ----------- encoder layer l: pre-LN self-attention (eps=1e-6) ----------
    h = _layer_norm(x, ln1_g[...], ln1_b[...], 1e-6)
    qkv = jnp.dot(_bf16(h), wqkv[...], preferred_element_type=jnp.float32) + bqkv[...]
    q = qkv[:, 0:EMB] * ATT_SCALE
    k = qkv[:, EMB:2 * EMB]
    v = qkv[:, 2 * EMB:3 * EMB]

    # Fold all heads into one score matmul: rows h*ROWS..h*ROWS+ROWS-1 of k_cat /
    # v_cat hold K / V with only head h's lanes kept, so q @ k_cat.T emits every
    # head's (ROWS, ROWS) score block side by side and p @ v_cat re-assembles the
    # concatenated multi-head output in a single matmul.
    hmask = hmask_ref[...]
    k_cat = jnp.concatenate([k] * HEADS, axis=0) * hmask          # (KCAT, EMB)
    v_cat = jnp.concatenate([v] * HEADS, axis=0) * hmask

    s = jax.lax.dot_general(q, k_cat, (((1,), (1,)), ((), ())),
                            preferred_element_type=jnp.float32)   # (ROWS, KCAT)
    s = s + abias_ref[...]                      # batch-axis attention structure (0 / -1e30)
    s = s - jnp.max(s, axis=-1, keepdims=True)  # per-row shift (softmax-invariant per block)
    p = jnp.exp(s)
    denom = jnp.dot(p, bsum_ref[...], preferred_element_type=jnp.float32)  # per-head sums
    p = p * pl.reciprocal(denom, approx=True)   # divide on the EUP slot
    attn = jnp.dot(p, v_cat, preferred_element_type=jnp.float32)           # (ROWS, EMB)

    o = jnp.dot(_bf16(attn), wo[...], preferred_element_type=jnp.float32) + bo[...]
    x = x + o                                   # residual (dropout = identity)

    # --------------------- feed-forward block (gelu) -----------------------
    h2 = _layer_norm(x, ln2_g[...], ln2_b[...], 1e-6)
    a = jnp.dot(_bf16(h2), w1[...], preferred_element_type=jnp.float32) + b1[...]
    a = _gelu_exact(a)
    f = jnp.dot(_bf16(a), w2[...], preferred_element_type=jnp.float32) + b2[...]
    x = x + f                                   # residual (dropout = identity)
    x_ref[...] = x

    # ------ last iteration: model LayerNorm + flatten + MLP head + bbox -----
    @pl.when(l == pl.num_programs(0) - 1)
    def _():
        xl = _layer_norm(x, lnf_g[...], lnf_b[...], 1e-5)
        # Flatten(start_dim=1): row b of xf = concat over tokens of xl[b*SEQ + t].
        xf = jnp.concatenate(
            [jnp.concatenate(
                [xl[b * SEQ + t: b * SEQ + t + 1, :] for t in range(SEQ)], axis=1)
             for b in range(B_IMG)], axis=0)                       # (B_IMG, FLAT)
        # MLP head (2 x Linear, no activation) + bbox projection (lane-dense 128 wide).
        y = jnp.dot(_bf16(xf), mw1[...], preferred_element_type=jnp.float32) + mb1[...]
        y = jnp.dot(_bf16(y), mw2[...], preferred_element_type=jnp.float32) + mb2[...]
        y = jnp.dot(_bf16(y), wbb[...], preferred_element_type=jnp.float32) + bbb[...]
        o_ref[...] = y.astype(o_ref.dtype)


# ------------------------------- model glue ---------------------------------

def vit_forward(img, params):
    b = img.shape[0]
    ph, pw = IMG // PATCH, IMG // PATCH
    # Patchify in XLA (cheap one-time layout prep): feature order (c, kh, kw), plus a
    # "cls indicator" column so the kernel's single matmul also emits the cls rows.
    patches = img.reshape(b, C_IN, ph, PATCH, pw, PATCH)
    patches = patches.transpose(0, 2, 4, 1, 3, 5).reshape(b, N_PATCHES, PATCH_FEAT)
    patch_rows = jnp.pad(patches, ((0, 0), (0, 0), (0, PATCH_IN - PATCH_FEAT)))
    cls_rows = jnp.zeros((b, 1, PATCH_IN), jnp.float32).at[:, :, CLS_COL].set(1.0)
    rows = jnp.concatenate([cls_rows, patch_rows], axis=1).reshape(b * SEQ, PATCH_IN)

    const_head = (rows, params["w_patch_ext"], params["pos_bias"],
                  params["head_mask"], params["attn_bias"], params["block_sum"])
    layer_args = (params["ln1_g"], params["ln1_b"], params["wqkv"], params["bqkv"],
                  params["wo"], params["bo"], params["ln2_g"], params["ln2_b"],
                  params["w1"], params["b1"], params["w2"], params["b2"])
    const_tail = (params["lnf_g"], params["lnf_b"],
                  params["mlp_w1"], params["mlp_b1"],
                  params["mlp_w2"], params["mlp_b2"],
                  params["w_bbox_pad"], params["b_bbox_pad"])

    def const_spec(a):                       # resident: same block every grid step
        zeros = (0,) * a.ndim
        return pl.BlockSpec(a.shape, lambda l: zeros)

    def layer_spec(a):                       # leading DEPTH axis indexed by the grid
        return pl.BlockSpec((None,) + a.shape[1:], lambda l: (l, 0, 0))

    in_specs = ([const_spec(a) for a in const_head]
                + [layer_spec(a) for a in layer_args]
                + [const_spec(a) for a in const_tail])

    out = pl.pallas_call(
        _vit_fused_kernel,
        out_shape=jax.ShapeDtypeStruct((B_IMG, BBOX_PAD), jnp.float32),
        grid=(DEPTH,),
        in_specs=in_specs,
        out_specs=pl.BlockSpec((B_IMG, BBOX_PAD), lambda l: (0, 0)),
        scratch_shapes=[pltpu.VMEM((ROWS, EMB), jnp.float32)],   # carried activation
        compiler_params=pltpu.CompilerParams(
            dimension_semantics=("arbitrary",)),   # layer axis is sequential (carried state)
    )(*const_head, *layer_args, *const_tail)
    # TODO(synk): nn.Dropout layers (p=0.3 head / 0.1 encoder) are identity (eval semantics).
    return out[:, :4]        # lane-dense in-kernel store; slice the 4 bbox coords outside


# ------------------------------- parameters ---------------------------------

def init_params(key):
    keys = iter(jax.random.split(key, 64))

    def W(shape, scale=0.02):
        return (scale * jax.random.normal(next(keys), shape)).astype(jnp.float32)

    # --- patch embedding (Conv2d-as-matmul) fused with cls token & positions ---
    w_patch = W((PATCH_FEAT, EMB))   # torch Conv2d weight permuted to (c*kh*kw, emb)
    b_patch = jnp.zeros((1, EMB), jnp.float32)
    cls = W((1, EMB), 1.0)
    pos = W((SEQ, EMB), 1.0)
    # Extended projection: extra "cls indicator" column carries (cls - b_patch) so the
    # cls rows come out as cls + pos[0]; remaining pad rows are zero.
    w_patch_ext = jnp.concatenate(
        [w_patch, cls - b_patch,
         jnp.zeros((PATCH_IN - PATCH_FEAT - 1, EMB), jnp.float32)], axis=0)
    pos_bias = jnp.tile(pos, (B_IMG, 1)) + b_patch                       # (ROWS, EMB)

    params = dict(
        w_patch_ext=w_patch_ext, pos_bias=pos_bias,
        lnf_g=jnp.ones((1, EMB), jnp.float32),
        lnf_b=jnp.zeros((1, EMB), jnp.float32),
    )

    # --- stacked per-layer encoder weights (layer axis pipelined by the grid) ---
    def stack(make):
        return jnp.stack([make() for _ in range(DEPTH)], axis=0)

    params["ln1_g"] = jnp.ones((DEPTH, 1, EMB), jnp.float32)
    params["ln1_b"] = jnp.zeros((DEPTH, 1, EMB), jnp.float32)
    params["ln2_g"] = jnp.ones((DEPTH, 1, EMB), jnp.float32)
    params["ln2_b"] = jnp.zeros((DEPTH, 1, EMB), jnp.float32)
    # packed QKV projection: columns are [Wq | Wk | Wv]; big weights stored bf16.
    params["wqkv"] = stack(lambda: W((EMB, 3 * EMB))).astype(jnp.bfloat16)
    params["bqkv"] = jnp.zeros((DEPTH, 1, 3 * EMB), jnp.float32)
    params["wo"] = stack(lambda: W((EMB, EMB))).astype(jnp.bfloat16)
    params["bo"] = jnp.zeros((DEPTH, 1, EMB), jnp.float32)
    params["w1"] = stack(lambda: W((EMB, FF))).astype(jnp.bfloat16)
    params["b1"] = jnp.zeros((DEPTH, 1, FF), jnp.float32)
    params["w2"] = stack(lambda: W((FF, EMB))).astype(jnp.bfloat16)
    params["b2"] = jnp.zeros((DEPTH, 1, EMB), jnp.float32)

    # --- MLP head (Linear(160,160) x2, no activation) + bbox projection ---
    params["mlp_w1"] = W((FLAT, FLAT)).astype(jnp.bfloat16)
    params["mlp_b1"] = jnp.zeros((1, FLAT), jnp.float32)
    params["mlp_w2"] = W((FLAT, FLAT)).astype(jnp.bfloat16)
    params["mlp_b2"] = jnp.zeros((1, FLAT), jnp.float32)
    # TODO(synk): reference constructs a fresh nn.Linear(x.size(-1), 4) every forward;
    # here it is a fixed deterministic linear, zero-padded to a lane-dense 128-wide tile.
    w_bbox = W((FLAT, 4))
    params["w_bbox_pad"] = jnp.pad(w_bbox, ((0, 0), (0, BBOX_PAD - 4))).astype(jnp.bfloat16)
    params["b_bbox_pad"] = jnp.zeros((1, BBOX_PAD), jnp.float32)

    # --- attention constants (hoisted out of the kernel body) ---
    hrow = jnp.arange(KCAT) // ROWS              # head id of each folded K/V row
    hlane = jnp.arange(EMB) // DH                # head id of each embedding lane
    params["head_mask"] = (hrow[:, None] == hlane[None, :]).astype(jnp.float32)  # (KCAT, EMB)
    tok_q = jnp.arange(ROWS) % SEQ
    tok_k = (jnp.arange(KCAT) % ROWS) % SEQ
    # batch_first=False semantics: a query row may only attend to key rows with the
    # same token index (attention runs over the image-batch axis).
    params["attn_bias"] = jnp.where(tok_q[:, None] == tok_k[None, :],
                                    0.0, -1e30).astype(jnp.float32)               # (ROWS, KCAT)
    params["block_sum"] = (hrow[:, None] == hrow[None, :]).astype(jnp.float32)    # (KCAT, KCAT)
    return params


if __name__ == "__main__":
    key = jax.random.PRNGKey(0)
    k_img, k_par = jax.random.split(key)
    img = jax.random.normal(k_img, (B_IMG, C_IN, IMG, IMG), dtype=jnp.float32)
    params = init_params(k_par)

    bbox = jax.jit(vit_forward)(img, params)
    bbox = jax.block_until_ready(bbox)

    assert bbox.shape == (B_IMG, 4), bbox.shape
    assert bool(jnp.all(jnp.isfinite(bbox)))
    print("KERNEL_OK")
</pallas_src>

<mosaic_0001>
module attributes {stable_mosaic.version = 11 : i64} {
  func.func @_vit_fused_kernel(%arg0: i32, %arg1: memref<10x256xf32, #tpu.memory_space<vmem>>, %arg2: memref<256x32xf32, #tpu.memory_space<vmem>>, %arg3: memref<10x32xf32, #tpu.memory_space<vmem>>, %arg4: memref<40x32xf32, #tpu.memory_space<vmem>>, %arg5: memref<10x40xf32, #tpu.memory_space<vmem>>, %arg6: memref<40x40xf32, #tpu.memory_space<vmem>>, %arg7: memref<1x1x32xf32, #tpu.memory_space<vmem>>, %arg8: memref<1x1x32xf32, #tpu.memory_space<vmem>>, %arg9: memref<1x32x96xbf16, #tpu.memory_space<vmem>>, %arg10: memref<1x1x96xf32, #tpu.memory_space<vmem>>, %arg11: memref<1x32x32xbf16, #tpu.memory_space<vmem>>, %arg12: memref<1x1x32xf32, #tpu.memory_space<vmem>>, %arg13: memref<1x1x32xf32, #tpu.memory_space<vmem>>, %arg14: memref<1x1x32xf32, #tpu.memory_space<vmem>>, %arg15: memref<1x32x2048xbf16, #tpu.memory_space<vmem>>, %arg16: memref<1x1x2048xf32, #tpu.memory_space<vmem>>, %arg17: memref<1x2048x32xbf16, #tpu.memory_space<vmem>>, %arg18: memref<1x1x32xf32, #tpu.memory_space<vmem>>, %arg19: memref<1x32xf32, #tpu.memory_space<vmem>>, %arg20: memref<1x32xf32, #tpu.memory_space<vmem>>, %arg21: memref<160x160xbf16, #tpu.memory_space<vmem>>, %arg22: memref<1x160xf32, #tpu.memory_space<vmem>>, %arg23: memref<160x160xbf16, #tpu.memory_space<vmem>>, %arg24: memref<1x160xf32, #tpu.memory_space<vmem>>, %arg25: memref<160x128xbf16, #tpu.memory_space<vmem>>, %arg26: memref<1x128xf32, #tpu.memory_space<vmem>>, %arg27: memref<2x128xf32, #tpu.memory_space<vmem>>, %arg28: memref<10x32xf32, #tpu.memory_space<vmem>>) attributes {dimension_semantics = [#tpu.dimension_semantics<arbitrary>], iteration_bounds = array<i64: 2>, scalar_prefetch = 0 : i64, scratch_operands = 1 : i64, tpu.core_type = #tpu.core_type<tc>, window_params = [{pipeline_mode = #tpu.pipeline_mode<synchronous>, transform_indices = @transform_0, window_bounds = array<i64: 10, 256>}, {pipeline_mode = #tpu.pipeline_mode<synchronous>, transform_indices = @transform_1, window_bounds = array<i64: 256, 32>}, {pipeline_mode = #tpu.pipeline_mode<synchronous>, transform_indices = @transform_2, window_bounds = array<i64: 10, 32>}, {pipeline_mode = #tpu.pipeline_mode<synchronous>, transform_indices = @transform_3, window_bounds = array<i64: 40, 32>}, {pipeline_mode = #tpu.pipeline_mode<synchronous>, transform_indices = @transform_4, window_bounds = array<i64: 10, 40>}, {pipeline_mode = #tpu.pipeline_mode<synchronous>, transform_indices = @transform_5, window_bounds = array<i64: 40, 40>}, {transform_indices = @transform_6, window_bounds = array<i64: 1, 1, 32>}, {transform_indices = @transform_7, window_bounds = array<i64: 1, 1, 32>}, {transform_indices = @transform_8, window_bounds = array<i64: 1, 32, 96>}, {transform_indices = @transform_9, window_bounds = array<i64: 1, 1, 96>}, {transform_indices = @transform_10, window_bounds = array<i64: 1, 32, 32>}, {transform_indices = @transform_11, window_bounds = array<i64: 1, 1, 32>}, {transform_indices = @transform_12, window_bounds = array<i64: 1, 1, 32>}, {transform_indices = @transform_13, window_bounds = array<i64: 1, 1, 32>}, {transform_indices = @transform_14, window_bounds = array<i64: 1, 32, 2048>}, {transform_indices = @transform_15, window_bounds = array<i64: 1, 1, 2048>}, {transform_indices = @transform_16, window_bounds = array<i64: 1, 2048, 32>}, {transform_indices = @transform_17, window_bounds = array<i64: 1, 1, 32>}, {pipeline_mode = #tpu.pipeline_mode<synchronous>, transform_indices = @transform_18, window_bounds = array<i64: 1, 32>}, {pipeline_mode = #tpu.pipeline_mode<synchronous>, transform_indices = @transform_19, window_bounds = array<i64: 1, 32>}, {pipeline_mode = #tpu.pipeline_mode<synchronous>, transform_indices = @transform_20, window_bounds = array<i64: 160, 160>}, {pipeline_mode = #tpu.pipeline_mode<synchronous>, transform_indices = @transform_21, window_bounds = array<i64: 1, 160>}, {pipeline_mode = #tpu.pipeline_mode<synchronous>, transform_indices = @transform_22, window_bounds = array<i64: 160, 160>}, {pipeline_mode = #tpu.pipeline_mode<synchronous>, transform_indices = @transform_23, window_bounds = array<i64: 1, 160>}, {pipeline_mode = #tpu.pipeline_mode<synchronous>, transform_indices = @transform_24, window_bounds = array<i64: 160, 128>}, {pipeline_mode = #tpu.pipeline_mode<synchronous>, transform_indices = @transform_25, window_bounds = array<i64: 1, 128>}, {pipeline_mode = #tpu.pipeline_mode<synchronous>, transform_indices = @transform_26, window_bounds = array<i64: 2, 128>}]} {
    %c0_i32 = arith.constant 0 : i32
    %0 = arith.cmpi eq, %arg0, %c0_i32 : i32
    %1 = arith.extui %0 : i1 to i32
    %c0_i32_0 = arith.constant 0 : i32
    %2 = arith.cmpi ne, %1, %c0_i32_0 : i32
    scf.if %2 {
      %c0_68 = arith.constant 0 : index
      %c0_69 = arith.constant 0 : index
      %121 = vector.load %arg1[%c0_68, %c0_69] : memref<10x256xf32, #tpu.memory_space<vmem>>, vector<10x256xf32>
      %c0_70 = arith.constant 0 : index
      %c0_71 = arith.constant 0 : index
      %122 = vector.load %arg2[%c0_70, %c0_71] : memref<256x32xf32, #tpu.memory_space<vmem>>, vector<256x32xf32>
      %cst_72 = arith.constant dense<0.000000e+00> : vector<10x32xf32>
      %123 = tpu.matmul %121, %122, %cst_72 {dimension_numbers = #tpu.dot_dimension_numbers<[1], [0], [0], [1], [0, 0, 1, 1], [], []>} : vector<10x256xf32>, vector<256x32xf32>, vector<10x32xf32> -> vector<10x32xf32>
      %c0_73 = arith.constant 0 : index
      %c0_74 = arith.constant 0 : index
      %124 = vector.load %arg3[%c0_73, %c0_74] : memref<10x32xf32, #tpu.memory_space<vmem>>, vector<10x32xf32>
      %125 = arith.addf %123, %124 : vector<10x32xf32>
      %c0_75 = arith.constant 0 : index
      %c0_76 = arith.constant 0 : index
      %126 = vector.load %arg28[%c0_75, %c0_76] : memref<10x32xf32, #tpu.memory_space<vmem>>, vector<10x32xf32>
      tpu.vector_store %arg28[%c0_75, %c0_76], %125 {strides = array<i32>} : memref<10x32xf32, #tpu.memory_space<vmem>>, vector<10x32xf32>,
    } else {
    }
    %c0 = arith.constant 0 : index
    %c0_1 = arith.constant 0 : index
    %3 = vector.load %arg28[%c0, %c0_1] : memref<10x32xf32, #tpu.memory_space<vmem>>, vector<10x32xf32>
    %c0_2 = arith.constant 0 : index
    %c0_3 = arith.constant 0 : index
    %c0_4 = arith.constant 0 : index
    %4 = vector.load %arg7[%c0_2, %c0_3, %c0_4] : memref<1x1x32xf32, #tpu.memory_space<vmem>>, vector<1x1x32xf32>
    %5 = vector.shape_cast %4 : vector<1x1x32xf32> to vector<1x32xf32>
    %c0_5 = arith.constant 0 : index
    %c0_6 = arith.constant 0 : index
    %c0_7 = arith.constant 0 : index
    %6 = vector.load %arg8[%c0_5, %c0_6, %c0_7] : memref<1x1x32xf32, #tpu.memory_space<vmem>>, vector<1x1x32xf32>
    %7 = vector.shape_cast %6 : vector<1x1x32xf32> to vector<1x32xf32>
    %cst = arith.constant dense<0.000000e+00> : vector<10xf32>
    %8 = vector.multi_reduction <add>, %3, %cst [1] : vector<10x32xf32> to vector<10xf32>
    %9 = vector.shape_cast %8 : vector<10xf32> to vector<10x1xf32>
    %cst_8 = arith.constant 3.200000e+01 : f32
    %10 = vector.broadcast %cst_8 : f32 to vector<10x1xf32>
    %11 = arith.divf %9, %10 : vector<10x1xf32>
    %12 = vector.broadcast %11 : vector<10x1xf32> to vector<10x32xf32>
    %13 = arith.subf %3, %12 : vector<10x32xf32>
    %14 = arith.mulf %13, %13 : vector<10x32xf32>
    %cst_9 = arith.constant dense<0.000000e+00> : vector<10xf32>
    %15 = vector.multi_reduction <add>, %14, %cst_9 [1] : vector<10x32xf32> to vector<10xf32>
    %16 = vector.shape_cast %15 : vector<10xf32> to vector<10x1xf32>
    %cst_10 = arith.constant 3.200000e+01 : f32
    %17 = vector.broadcast %cst_10 : f32 to vector<10x1xf32>
    %18 = arith.divf %16, %17 : vector<10x1xf32>
    %cst_11 = arith.constant 9.99999997E-7 : f32
    %19 = vector.broadcast %cst_11 : f32 to vector<10x1xf32>
    %20 = arith.addf %18, %19 : vector<10x1xf32>
    %21 = math.rsqrt %20 : vector<10x1xf32>
    %22 = vector.broadcast %21 : vector<10x1xf32> to vector<10x32xf32>
    %23 = arith.mulf %13, %22 : vector<10x32xf32>
    %24 = vector.broadcast %5 : vector<1x32xf32> to vector<10x32xf32>
    %25 = arith.mulf %23, %24 : vector<10x32xf32>
    %26 = vector.broadcast %7 : vector<1x32xf32> to vector<10x32xf32>
    %27 = arith.addf %25, %26 : vector<10x32xf32>
    %28 = arith.truncf %27 : vector<10x32xf32> to vector<10x32xbf16>
    %c0_12 = arith.constant 0 : index
    %c0_13 = arith.constant 0 : index
    %c0_14 = arith.constant 0 : index
    %29 = vector.load %arg9[%c0_12, %c0_13, %c0_14] : memref<1x32x96xbf16, #tpu.memory_space<vmem>>, vector<1x32x96xbf16>
    %30 = vector.shape_cast %29 : vector<1x32x96xbf16> to vector<32x96xbf16>
    %cst_15 = arith.constant dense<0.000000e+00> : vector<10x96xf32>
    %31 = tpu.matmul %28, %30, %cst_15 {dimension_numbers = #tpu.dot_dimension_numbers<[1], [0], [0], [1], [0, 0, 1, 1], [], []>} : vector<10x32xbf16>, vector<32x96xbf16>, vector<10x96xf32> -> vector<10x96xf32>
    %c0_16 = arith.constant 0 : index
    %c0_17 = arith.constant 0 : index
    %c0_18 = arith.constant 0 : index
    %32 = vector.load %arg10[%c0_16, %c0_17, %c0_18] : memref<1x1x96xf32, #tpu.memory_space<vmem>>, vector<1x1x96xf32>
    %33 = vector.shape_cast %32 : vector<1x1x96xf32> to vector<1x96xf32>
    %34 = vector.broadcast %33 : vector<1x96xf32> to vector<10x96xf32>
    %35 = arith.addf %31, %34 : vector<10x96xf32>
    %36 = vector.extract_strided_slice %35 {offsets = [0, 0], sizes = [10, 32], strides = [1, 1]} : vector<10x96xf32> to vector<10x32xf32>
    %cst_19 = arith.constant 0.353553385 : f32
    %37 = vector.broadcast %cst_19 : f32 to vector<10x32xf32>
    %38 = arith.mulf %36, %37 : vector<10x32xf32>
    %39 = vector.extract_strided_slice %35 {offsets = [0, 32], sizes = [10, 32], strides = [1, 1]} : vector<10x96xf32> to vector<10x32xf32>
    %40 = vector.extract_strided_slice %35 {offsets = [0, 64], sizes = [10, 32], strides = [1, 1]} : vector<10x96xf32> to vector<10x32xf32>
    %c0_20 = arith.constant 0 : index
    %c0_21 = arith.constant 0 : index
    %41 = vector.load %arg4[%c0_20, %c0_21] : memref<40x32xf32, #tpu.memory_space<vmem>>, vector<40x32xf32>
    %42 = tpu.concatenate %39, %39, %39, %39 in 0 : vector<10x32xf32>, vector<10x32xf32>, vector<10x32xf32>, vector<10x32xf32> -> vector<40x32xf32>
    %43 = arith.mulf %42, %41 : vector<40x32xf32>
    %44 = tpu.concatenate %40, %40, %40, %40 in 0 : vector<10x32xf32>, vector<10x32xf32>, vector<10x32xf32>, vector<10x32xf32> -> vector<40x32xf32>
    %45 = arith.mulf %44, %41 : vector<40x32xf32>
    %cst_22 = arith.constant dense<0.000000e+00> : vector<10x40xf32>
    %46 = tpu.matmul %38, %43, %cst_22 {dimension_numbers = #tpu.dot_dimension_numbers<[1], [1], [0], [0], [0, 0, 1, 0], [], []>} : vector<10x32xf32>, vector<40x32xf32>, vector<10x40xf32> -> vector<10x40xf32>
    %c0_23 = arith.constant 0 : index
    %c0_24 = arith.constant 0 : index
    %47 = vector.load %arg5[%c0_23, %c0_24] : memref<10x40xf32, #tpu.memory_space<vmem>>, vector<10x40xf32>
    %48 = arith.addf %46, %47 : vector<10x40xf32>
    %cst_25 = arith.constant dense<0xFF800000> : vector<10xf32>
    %49 = vector.multi_reduction <maximumf>, %48, %cst_25 [1] : vector<10x40xf32> to vector<10xf32>
    %50 = vector.shape_cast %49 : vector<10xf32> to vector<10x1xf32>
    %51 = vector.broadcast %50 : vector<10x1xf32> to vector<10x40xf32>
    %52 = arith.subf %48, %51 : vector<10x40xf32>
    %53 = math.exp %52 : vector<10x40xf32>
    %c0_26 = arith.constant 0 : index
    %c0_27 = arith.constant 0 : index
    %54 = vector.load %arg6[%c0_26, %c0_27] : memref<40x40xf32, #tpu.memory_space<vmem>>, vector<40x40xf32>
    %cst_28 = arith.constant dense<0.000000e+00> : vector<10x40xf32>
    %55 = tpu.matmul %53, %54, %cst_28 {dimension_numbers = #tpu.dot_dimension_numbers<[1], [0], [0], [1], [0, 0, 1, 1], [], []>} : vector<10x40xf32>, vector<40x40xf32>, vector<10x40xf32> -> vector<10x40xf32>
    %56 = tpu.reciprocal %55 {approx = true} : vector<10x40xf32> -> vector<10x40xf32>
    %57 = arith.mulf %53, %56 : vector<10x40xf32>
    %cst_29 = arith.constant dense<0.000000e+00> : vector<10x32xf32>
    %58 = tpu.matmul %57, %45, %cst_29 {dimension_numbers = #tpu.dot_dimension_numbers<[1], [0], [0], [1], [0, 0, 1, 1], [], []>} : vector<10x40xf32>, vector<40x32xf32>, vector<10x32xf32> -> vector<10x32xf32>
    %59 = arith.truncf %58 : vector<10x32xf32> to vector<10x32xbf16>
    %c0_30 = arith.constant 0 : index
    %c0_31 = arith.constant 0 : index
    %c0_32 = arith.constant 0 : index
    %60 = vector.load %arg11[%c0_30, %c0_31, %c0_32] : memref<1x32x32xbf16, #tpu.memory_space<vmem>>, vector<1x32x32xbf16>
    %61 = vector.shape_cast %60 : vector<1x32x32xbf16> to vector<32x32xbf16>
    %cst_33 = arith.constant dense<0.000000e+00> : vector<10x32xf32>
    %62 = tpu.matmul %59, %61, %cst_33 {dimension_numbers = #tpu.dot_dimension_numbers<[1], [0], [0], [1], [0, 0, 1, 1], [], []>} : vector<10x32xbf16>, vector<32x32xbf16>, vector<10x32xf32> -> vector<10x32xf32>
    %c0_34 = arith.constant 0 : index
    %c0_35 = arith.constant 0 : index
    %c0_36 = arith.constant 0 : index
    %63 = vector.load %arg12[%c0_34, %c0_35, %c0_36] : memref<1x1x32xf32, #tpu.memory_space<vmem>>, vector<1x1x32xf32>
    %64 = vector.shape_cast %63 : vector<1x1x32xf32> to vector<1x32xf32>
    %65 = vector.broadcast %64 : vector<1x32xf32> to vector<10x32xf32>
    %66 = arith.addf %62, %65 : vector<10x32xf32>
    %67 = arith.addf %3, %66 : vector<10x32xf32>
    %c0_37 = arith.constant 0 : index
    %c0_38 = arith.constant 0 : index
    %c0_39 = arith.constant 0 : index
    %68 = vector.load %arg13[%c0_37, %c0_38, %c0_39] : memref<1x1x32xf32, #tpu.memory_space<vmem>>, vector<1x1x32xf32>
    %69 = vector.shape_cast %68 : vector<1x1x32xf32> to vector<1x32xf32>
    %c0_40 = arith.constant 0 : index
    %c0_41 = arith.constant 0 : index
    %c0_42 = arith.constant 0 : index
    %70 = vector.load %arg14[%c0_40, %c0_41, %c0_42] : memref<1x1x32xf32, #tpu.memory_space<vmem>>, vector<1x1x32xf32>
    %71 = vector.shape_cast %70 : vector<1x1x32xf32> to vector<1x32xf32>
    %cst_43 = arith.constant dense<0.000000e+00> : vector<10xf32>
    %72 = vector.multi_reduction <add>, %67, %cst_43 [1] : vector<10x32xf32> to vector<10xf32>
    %73 = vector.shape_cast %72 : vector<10xf32> to vector<10x1xf32>
    %cst_44 = arith.constant 3.200000e+01 : f32
    %74 = vector.broadcast %cst_44 : f32 to vector<10x1xf32>
    %75 = arith.divf %73, %74 : vector<10x1xf32>
    %76 = vector.broadcast %75 : vector<10x1xf32> to vector<10x32xf32>
    %77 = arith.subf %67, %76 : vector<10x32xf32>
    %78 = arith.mulf %77, %77 : vector<10x32xf32>
    %cst_45 = arith.constant dense<0.000000e+00> : vector<10xf32>
    %79 = vector.multi_reduction <add>, %78, %cst_45 [1] : vector<10x32xf32> to vector<10xf32>
    %80 = vector.shape_cast %79 : vector<10xf32> to vector<10x1xf32>
    %cst_46 = arith.constant 3.200000e+01 : f32
    %81 = vector.broadcast %cst_46 : f32 to vector<10x1xf32>
    %82 = arith.divf %80, %81 : vector<10x1xf32>
    %cst_47 = arith.constant 9.99999997E-7 : f32
    %83 = vector.broadcast %cst_47 : f32 to vector<10x1xf32>
    %84 = arith.addf %82, %83 : vector<10x1xf32>
    %85 = math.rsqrt %84 : vector<10x1xf32>
    %86 = vector.broadcast %85 : vector<10x1xf32> to vector<10x32xf32>
    %87 = arith.mulf %77, %86 : vector<10x32xf32>
    %88 = vector.broadcast %69 : vector<1x32xf32> to vector<10x32xf32>
    %89 = arith.mulf %87, %88 : vector<10x32xf32>
    %90 = vector.broadcast %71 : vector<1x32xf32> to vector<10x32xf32>
    %91 = arith.addf %89, %90 : vector<10x32xf32>
    %92 = arith.truncf %91 : vector<10x32xf32> to vector<10x32xbf16>
    %c0_48 = arith.constant 0 : index
    %c0_49 = arith.constant 0 : index
    %c0_50 = arith.constant 0 : index
    %93 = vector.load %arg15[%c0_48, %c0_49, %c0_50] : memref<1x32x2048xbf16, #tpu.memory_space<vmem>>, vector<1x32x2048xbf16>
    %94 = vector.shape_cast %93 : vector<1x32x2048xbf16> to vector<32x2048xbf16>
    %cst_51 = arith.constant dense<0.000000e+00> : vector<10x2048xf32>
    %95 = tpu.matmul %92, %94, %cst_51 {dimension_numbers = #tpu.dot_dimension_numbers<[1], [0], [0], [1], [0, 0, 1, 1], [], []>} : vector<10x32xbf16>, vector<32x2048xbf16>, vector<10x2048xf32> -> vector<10x2048xf32>
    %c0_52 = arith.constant 0 : index
    %c0_53 = arith.constant 0 : index
    %c0_54 = arith.constant 0 : index
    %96 = vector.load %arg16[%c0_52, %c0_53, %c0_54] : memref<1x1x2048xf32, #tpu.memory_space<vmem>>, vector<1x1x2048xf32>
    %97 = vector.shape_cast %96 : vector<1x1x2048xf32> to vector<1x2048xf32>
    %98 = vector.broadcast %97 : vector<1x2048xf32> to vector<10x2048xf32>
    %99 = arith.addf %95, %98 : vector<10x2048xf32>
    %cst_55 = arith.constant 5.000000e-01 : f32
    %100 = vector.broadcast %cst_55 : f32 to vector<10x2048xf32>
    %101 = arith.mulf %100, %99 : vector<10x2048xf32>
    %cst_56 = arith.constant 0.707106769 : f32
    %102 = vector.broadcast %cst_56 : f32 to vector<10x2048xf32>
    %103 = arith.mulf %99, %102 : vector<10x2048xf32>
    %104 = math.erf %103 : vector<10x2048xf32>
    %cst_57 = arith.constant 1.000000e+00 : f32
    %105 = vector.broadcast %cst_57 : f32 to vector<10x2048xf32>
    %106 = arith.addf %105, %104 : vector<10x2048xf32>
    %107 = arith.mulf %101, %106 : vector<10x2048xf32>
    %108 = arith.truncf %107 : vector<10x2048xf32> to vector<10x2048xbf16>
    %c0_58 = arith.constant 0 : index
    %c0_59 = arith.constant 0 : index
    %c0_60 = arith.constant 0 : index
    %109 = vector.load %arg17[%c0_58, %c0_59, %c0_60] : memref<1x2048x32xbf16, #tpu.memory_space<vmem>>, vector<1x2048x32xbf16>
    %110 = vector.shape_cast %109 : vector<1x2048x32xbf16> to vector<2048x32xbf16>
    %cst_61 = arith.constant dense<0.000000e+00> : vector<10x32xf32>
    %111 = tpu.matmul %108, %110, %cst_61 {dimension_numbers = #tpu.dot_dimension_numbers<[1], [0], [0], [1], [0, 0, 1, 1], [], []>} : vector<10x2048xbf16>, vector<2048x32xbf16>, vector<10x32xf32> -> vector<10x32xf32>
    %c0_62 = arith.constant 0 : index
    %c0_63 = arith.constant 0 : index
    %c0_64 = arith.constant 0 : index
    %112 = vector.load %arg18[%c0_62, %c0_63, %c0_64] : memref<1x1x32xf32, #tpu.memory_space<vmem>>, vector<1x1x32xf32>
    %113 = vector.shape_cast %112 : vector<1x1x32xf32> to vector<1x32xf32>
    %114 = vector.broadcast %113 : vector<1x32xf32> to vector<10x32xf32>
    %115 = arith.addf %111, %114 : vector<10x32xf32>
    %116 = arith.addf %67, %115 : vector<10x32xf32>
    %c0_65 = arith.constant 0 : index
    %c0_66 = arith.constant 0 : index
    %117 = vector.load %arg28[%c0_65, %c0_66] : memref<10x32xf32, #tpu.memory_space<vmem>>, vector<10x32xf32>
    tpu.vector_store %arg28[%c0_65, %c0_66], %116 {strides = array<i32>} : memref<10x32xf32, #tpu.memory_space<vmem>>, vector<10x32xf32>,
    %c1_i32 = arith.constant 1 : i32
    %118 = arith.cmpi eq, %arg0, %c1_i32 : i32
    %119 = arith.extui %118 : i1 to i32
    %c0_i32_67 = arith.constant 0 : i32
    %120 = arith.cmpi ne, %119, %c0_i32_67 : i32
    scf.if %120 {
      %c0_68 = arith.constant 0 : index
      %c0_69 = arith.constant 0 : index
      %121 = vector.load %arg19[%c0_68, %c0_69] : memref<1x32xf32, #tpu.memory_space<vmem>>, vector<1x32xf32>
      %c0_70 = arith.constant 0 : index
      %c0_71 = arith.constant 0 : index
      %122 = vector.load %arg20[%c0_70, %c0_71] : memref<1x32xf32, #tpu.memory_space<vmem>>, vector<1x32xf32>
      %cst_72 = arith.constant dense<0.000000e+00> : vector<10xf32>
      %123 = vector.multi_reduction <add>, %116, %cst_72 [1] : vector<10x32xf32> to vector<10xf32>
      %124 = vector.shape_cast %123 : vector<10xf32> to vector<10x1xf32>
      %cst_73 = arith.constant 3.200000e+01 : f32
      %125 = vector.broadcast %cst_73 : f32 to vector<10x1xf32>
      %126 = arith.divf %124, %125 : vector<10x1xf32>
      %127 = vector.broadcast %126 : vector<10x1xf32> to vector<10x32xf32>
      %128 = arith.subf %116, %127 : vector<10x32xf32>
      %129 = arith.mulf %128, %128 : vector<10x32xf32>
      %cst_74 = arith.constant dense<0.000000e+00> : vector<10xf32>
      %130 = vector.multi_reduction <add>, %129, %cst_74 [1] : vector<10x32xf32> to vector<10xf32>
      %131 = vector.shape_cast %130 : vector<10xf32> to vector<10x1xf32>
      %cst_75 = arith.constant 3.200000e+01 : f32
      %132 = vector.broadcast %cst_75 : f32 to vector<10x1xf32>
      %133 = arith.divf %131, %132 : vector<10x1xf32>
      %cst_76 = arith.constant 9.99999974E-6 : f32
      %134 = vector.broadcast %cst_76 : f32 to vector<10x1xf32>
      %135 = arith.addf %133, %134 : vector<10x1xf32>
      %136 = math.rsqrt %135 : vector<10x1xf32>
      %137 = vector.broadcast %136 : vector<10x1xf32> to vector<10x32xf32>
      %138 = arith.mulf %128, %137 : vector<10x32xf32>
      %139 = vector.broadcast %121 : vector<1x32xf32> to vector<10x32xf32>
      %140 = arith.mulf %138, %139 : vector<10x32xf32>
      %141 = vector.broadcast %122 : vector<1x32xf32> to vector<10x32xf32>
      %142 = arith.addf %140, %141 : vector<10x32xf32>
      %143 = vector.extract_strided_slice %142 {offsets = [0, 0], sizes = [1, 32], strides = [1, 1]} : vector<10x32xf32> to vector<1x32xf32>
      %144 = vector.extract_strided_slice %142 {offsets = [1, 0], sizes = [1, 32], strides = [1, 1]} : vector<10x32xf32> to vector<1x32xf32>
      %145 = vector.extract_strided_slice %142 {offsets = [2, 0], sizes = [1, 32], strides = [1, 1]} : vector<10x32xf32> to vector<1x32xf32>
      %146 = vector.extract_strided_slice %142 {offsets = [3, 0], sizes = [1, 32], strides = [1, 1]} : vector<10x32xf32> to vector<1x32xf32>
      %147 = vector.extract_strided_slice %142 {offsets = [4, 0], sizes = [1, 32], strides = [1, 1]} : vector<10x32xf32> to vector<1x32xf32>
      %148 = tpu.concatenate %143, %144, %145, %146, %147 in 1 : vector<1x32xf32>, vector<1x32xf32>, vector<1x32xf32>, vector<1x32xf32>, vector<1x32xf32> -> vector<1x160xf32>
      %149 = vector.extract_strided_slice %142 {offsets = [5, 0], sizes = [1, 32], strides = [1, 1]} : vector<10x32xf32> to vector<1x32xf32>
      %150 = vector.extract_strided_slice %142 {offsets = [6, 0], sizes = [1, 32], strides = [1, 1]} : vector<10x32xf32> to vector<1x32xf32>
      %151 = vector.extract_strided_slice %142 {offsets = [7, 0], sizes = [1, 32], strides = [1, 1]} : vector<10x32xf32> to vector<1x32xf32>
      %152 = vector.extract_strided_slice %142 {offsets = [8, 0], sizes = [1, 32], strides = [1, 1]} : vector<10x32xf32> to vector<1x32xf32>
      %153 = vector.extract_strided_slice %142 {offsets = [9, 0], sizes = [1, 32], strides = [1, 1]} : vector<10x32xf32> to vector<1x32xf32>
      %154 = tpu.concatenate %149, %150, %151, %152, %153 in 1 : vector<1x32xf32>, vector<1x32xf32>, vector<1x32xf32>, vector<1x32xf32>, vector<1x32xf32> -> vector<1x160xf32>
      %155 = tpu.concatenate %148, %154 in 0 : vector<1x160xf32>, vector<1x160xf32> -> vector<2x160xf32>
      %156 = arith.truncf %155 : vector<2x160xf32> to vector<2x160xbf16>
      %c0_77 = arith.constant 0 : index
      %c0_78 = arith.constant 0 : index
      %157 = vector.load %arg21[%c0_77, %c0_78] : memref<160x160xbf16, #tpu.memory_space<vmem>>, vector<160x160xbf16>
      %cst_79 = arith.constant dense<0.000000e+00> : vector<2x160xf32>
      %158 = tpu.matmul %156, %157, %cst_79 {dimension_numbers = #tpu.dot_dimension_numbers<[1], [0], [0], [1], [0, 0, 1, 1], [], []>} : vector<2x160xbf16>, vector<160x160xbf16>, vector<2x160xf32> -> vector<2x160xf32>
      %c0_80 = arith.constant 0 : index
      %c0_81 = arith.constant 0 : index
      %159 = vector.load %arg22[%c0_80, %c0_81] : memref<1x160xf32, #tpu.memory_space<vmem>>, vector<1x160xf32>
      %160 = vector.broadcast %159 : vector<1x160xf32> to vector<2x160xf32>
      %161 = arith.addf %158, %160 : vector<2x160xf32>
      %162 = arith.truncf %161 : vector<2x160xf32> to vector<2x160xbf16>
      %c0_82 = arith.constant 0 : index
      %c0_83 = arith.constant 0 : index
      %163 = vector.load %arg23[%c0_82, %c0_83] : memref<160x160xbf16, #tpu.memory_space<vmem>>, vector<160x160xbf16>
      %cst_84 = arith.constant dense<0.000000e+00> : vector<2x160xf32>
      %164 = tpu.matmul %162, %163, %cst_84 {dimension_numbers = #tpu.dot_dimension_numbers<[1], [0], [0], [1], [0, 0, 1, 1], [], []>} : vector<2x160xbf16>, vector<160x160xbf16>, vector<2x160xf32> -> vector<2x160xf32>
      %c0_85 = arith.constant 0 : index
      %c0_86 = arith.constant 0 : index
      %165 = vector.load %arg24[%c0_85, %c0_86] : memref<1x160xf32, #tpu.memory_space<vmem>>, vector<1x160xf32>
      %166 = vector.broadcast %165 : vector<1x160xf32> to vector<2x160xf32>
      %167 = arith.addf %164, %166 : vector<2x160xf32>
      %168 = arith.truncf %167 : vector<2x160xf32> to vector<2x160xbf16>
      %c0_87 = arith.constant 0 : index
      %c0_88 = arith.constant 0 : index
      %169 = vector.load %arg25[%c0_87, %c0_88] : memref<160x128xbf16, #tpu.memory_space<vmem>>, vector<160x128xbf16>
      %cst_89 = arith.constant dense<0.000000e+00> : vector<2x128xf32>
      %170 = tpu.matmul %168, %169, %cst_89 {dimension_numbers = #tpu.dot_dimension_numbers<[1], [0], [0], [1], [0, 0, 1, 1], [], []>} : vector<2x160xbf16>, vector<160x128xbf16>, vector<2x128xf32> -> vector<2x128xf32>
      %c0_90 = arith.constant 0 : index
      %c0_91 = arith.constant 0 : index
      %171 = vector.load %arg26[%c0_90, %c0_91] : memref<1x128xf32, #tpu.memory_space<vmem>>, vector<1x128xf32>
      %172 = vector.broadcast %171 : vector<1x128xf32> to vector<2x128xf32>
      %173 = arith.addf %170, %172 : vector<2x128xf32>
      %c0_92 = arith.constant 0 : index
      %c0_93 = arith.constant 0 : index
      %174 = vector.load %arg27[%c0_92, %c0_93] : memref<2x128xf32, #tpu.memory_space<vmem>>, vector<2x128xf32>
      tpu.vector_store %arg27[%c0_92, %c0_93], %173 {strides = array<i32>} : memref<2x128xf32, #tpu.memory_space<vmem>>, vector<2x128xf32>,
    } else {
    }
    return
  }
  func.func @transform_0(%arg0: i32) -> (i32, i32) {
    %c0_i32 = arith.constant 0 : i32
    %c0_i32_0 = arith.constant 0 : i32
    %c0_i32_1 = arith.constant 0 : i32
    return %c0_i32, %c0_i32_0 : i32, i32
  }
  func.func @transform_1(%arg0: i32) -> (i32, i32) {
    %c0_i32 = arith.constant 0 : i32
    %c0_i32_0 = arith.constant 0 : i32
    %c0_i32_1 = arith.constant 0 : i32
    return %c0_i32, %c0_i32_0 : i32, i32
  }
  func.func @transform_2(%arg0: i32) -> (i32, i32) {
    %c0_i32 = arith.constant 0 : i32
    %c0_i32_0 = arith.constant 0 : i32
    %c0_i32_1 = arith.constant 0 : i32
    return %c0_i32, %c0_i32_0 : i32, i32
  }
  func.func @transform_3(%arg0: i32) -> (i32, i32) {
    %c0_i32 = arith.constant 0 : i32
    %c0_i32_0 = arith.constant 0 : i32
    %c0_i32_1 = arith.constant 0 : i32
    return %c0_i32, %c0_i32_0 : i32, i32
  }
  func.func @transform_4(%arg0: i32) -> (i32, i32) {
    %c0_i32 = arith.constant 0 : i32
    %c0_i32_0 = arith.constant 0 : i32
    %c0_i32_1 = arith.constant 0 : i32
    return %c0_i32, %c0_i32_0 : i32, i32
  }
  func.func @transform_5(%arg0: i32) -> (i32, i32) {
    %c0_i32 = arith.constant 0 : i32
    %c0_i32_0 = arith.constant 0 : i32
    %c0_i32_1 = arith.constant 0 : i32
    return %c0_i32, %c0_i32_0 : i32, i32
  }
  func.func @transform_6(%arg0: i32) -> (i32, i32, i32) {
    %c0_i32 = arith.constant 0 : i32
    %c0_i32_0 = arith.constant 0 : i32
    %c0_i32_1 = arith.constant 0 : i32
    return %arg0, %c0_i32, %c0_i32_0 : i32, i32, i32
  }
  func.func @transform_7(%arg0: i32) -> (i32, i32, i32) {
    %c0_i32 = arith.constant 0 : i32
    %c0_i32_0 = arith.constant 0 : i32
    %c0_i32_1 = arith.constant 0 : i32
    return %arg0, %c0_i32, %c0_i32_0 : i32, i32, i32
  }
  func.func @transform_8(%arg0: i32) -> (i32, i32, i32) {
    %c0_i32 = arith.constant 0 : i32
    %c0_i32_0 = arith.constant 0 : i32
    %c0_i32_1 = arith.constant 0 : i32
    return %arg0, %c0_i32, %c0_i32_0 : i32, i32, i32
  }
  func.func @transform_9(%arg0: i32) -> (i32, i32, i32) {
    %c0_i32 = arith.constant 0 : i32
    %c0_i32_0 = arith.constant 0 : i32
    %c0_i32_1 = arith.constant 0 : i32
    return %arg0, %c0_i32, %c0_i32_0 : i32, i32, i32
  }
  func.func @transform_10(%arg0: i32) -> (i32, i32, i32) {
    %c0_i32 = arith.constant 0 : i32
    %c0_i32_0 = arith.constant 0 : i32
    %c0_i32_1 = arith.constant 0 : i32
    return %arg0, %c0_i32, %c0_i32_0 : i32, i32, i32
  }
  func.func @transform_11(%arg0: i32) -> (i32, i32, i32) {
    %c0_i32 = arith.constant 0 : i32
    %c0_i32_0 = arith.constant 0 : i32
    %c0_i32_1 = arith.constant 0 : i32
    return %arg0, %c0_i32, %c0_i32_0 : i32, i32, i32
  }
  func.func @transform_12(%arg0: i32) -> (i32, i32, i32) {
    %c0_i32 = arith.constant 0 : i32
    %c0_i32_0 = arith.constant 0 : i32
    %c0_i32_1 = arith.constant 0 : i32
    return %arg0, %c0_i32, %c0_i32_0 : i32, i32, i32
  }
  func.func @transform_13(%arg0: i32) -> (i32, i32, i32) {
    %c0_i32 = arith.constant 0 : i32
    %c0_i32_0 = arith.constant 0 : i32
    %c0_i32_1 = arith.constant 0 : i32
    return %arg0, %c0_i32, %c0_i32_0 : i32, i32, i32
  }
  func.func @transform_14(%arg0: i32) -> (i32, i32, i32) {
    %c0_i32 = arith.constant 0 : i32
    %c0_i32_0 = arith.constant 0 : i32
    %c0_i32_1 = arith.constant 0 : i32
    return %arg0, %c0_i32, %c0_i32_0 : i32, i32, i32
  }
  func.func @transform_15(%arg0: i32) -> (i32, i32, i32) {
    %c0_i32 = arith.constant 0 : i32
    %c0_i32_0 = arith.constant 0 : i32
    %c0_i32_1 = arith.constant 0 : i32
    return %arg0, %c0_i32, %c0_i32_0 : i32, i32, i32
  }
  func.func @transform_16(%arg0: i32) -> (i32, i32, i32) {
    %c0_i32 = arith.constant 0 : i32
    %c0_i32_0 = arith.constant 0 : i32
    %c0_i32_1 = arith.constant 0 : i32
    return %arg0, %c0_i32, %c0_i32_0 : i32, i32, i32
  }
  func.func @transform_17(%arg0: i32) -> (i32, i32, i32) {
    %c0_i32 = arith.constant 0 : i32
    %c0_i32_0 = arith.constant 0 : i32
    %c0_i32_1 = arith.constant 0 : i32
    return %arg0, %c0_i32, %c0_i32_0 : i32, i32, i32
  }
  func.func @transform_18(%arg0: i32) -> (i32, i32) {
    %c0_i32 = arith.constant 0 : i32
    %c0_i32_0 = arith.constant 0 : i32
    %c0_i32_1 = arith.constant 0 : i32
    return %c0_i32, %c0_i32_0 : i32, i32
  }
  func.func @transform_19(%arg0: i32) -> (i32, i32) {
    %c0_i32 = arith.constant 0 : i32
    %c0_i32_0 = arith.constant 0 : i32
    %c0_i32_1 = arith.constant 0 : i32
    return %c0_i32, %c0_i32_0 : i32, i32
  }
  func.func @transform_20(%arg0: i32) -> (i32, i32) {
    %c0_i32 = arith.constant 0 : i32
    %c0_i32_0 = arith.constant 0 : i32
    %c0_i32_1 = arith.constant 0 : i32
    return %c0_i32, %c0_i32_0 : i32, i32
  }
  func.func @transform_21(%arg0: i32) -> (i32, i32) {
    %c0_i32 = arith.constant 0 : i32
    %c0_i32_0 = arith.constant 0 : i32
    %c0_i32_1 = arith.constant 0 : i32
    return %c0_i32, %c0_i32_0 : i32, i32
  }
  func.func @transform_22(%arg0: i32) -> (i32, i32) {
    %c0_i32 = arith.constant 0 : i32
    %c0_i32_0 = arith.constant 0 : i32
    %c0_i32_1 = arith.constant 0 : i32
    return %c0_i32, %c0_i32_0 : i32, i32
  }
  func.func @transform_23(%arg0: i32) -> (i32, i32) {
    %c0_i32 = arith.constant 0 : i32
    %c0_i32_0 = arith.constant 0 : i32
    %c0_i32_1 = arith.constant 0 : i32
    return %c0_i32, %c0_i32_0 : i32, i32
  }
  func.func @transform_24(%arg0: i32) -> (i32, i32) {
    %c0_i32 = arith.constant 0 : i32
    %c0_i32_0 = arith.constant 0 : i32
    %c0_i32_1 = arith.constant 0 : i32
    return %c0_i32, %c0_i32_0 : i32, i32
  }
  func.func @transform_25(%arg0: i32) -> (i32, i32) {
    %c0_i32 = arith.constant 0 : i32
    %c0_i32_0 = arith.constant 0 : i32
    %c0_i32_1 = arith.constant 0 : i32
    return %c0_i32, %c0_i32_0 : i32, i32
  }
  func.func @transform_26(%arg0: i32) -> (i32, i32) {
    %c0_i32 = arith.constant 0 : i32
    %c0_i32_0 = arith.constant 0 : i32
    %c0_i32_1 = arith.constant 0 : i32
    return %c0_i32, %c0_i32_0 : i32, i32
  }
}

</mosaic_0001>

<bundles_post_ra>
// kernel: vit_forward.1
= control target key start
LH: loop header
LB: loop body
LE: loop exit
PB: predicated region body
PF: predicated region fallthrough
CT: control target
= control target key end

     0   :  { %s6783_s0 = inlined_call_operand.vmem [shape: f32[10,256], index: 0, kind: input, shape index: {}]   ;;  %s6784_s1 = inlined_call_operand.vmem [shape: f32[256,32], index: 1, kind: input, shape index: {}]   ;;  %s6785_s2 = inlined_call_operand.vmem [shape: f32[10,32], index: 2, kind: input, shape index: {}]   ;;  %s6786_s3 = inlined_call_operand.vmem [shape: f32[40,32], index: 3, kind: input, shape index: {}]   ;;  %s6787_s4 = inlined_call_operand.vmem [shape: f32[10,40], index: 4, kind: input, shape index: {}]   ;;  %s6788_s5 = inlined_call_operand.vmem [shape: f32[40,40], index: 5, kind: input, shape index: {}]   ;;  %s6789_s6 = inlined_call_operand.vmem [shape: f32[2,1,32], index: 6, kind: input, shape index: {}]   ;;  %s6790_s7 = inlined_call_operand.vmem [shape: f32[2,1,32], index: 7, kind: input, shape index: {}]   ;;  %s6791_s8 = inlined_call_operand.vmem [shape: bf16[2,32,96], index: 8, kind: input, shape index: {}]   ;;  %s6792_s9 = inlined_call_operand.vmem [shape: f32[2,1,96], index: 9, kind: input, shape index: {}]   ;;  %s6793_s10 = inlined_call_operand.vmem [shape: bf16[2,32,32], index: 10, kind: input, shape index: {}]   ;;  %s6794_s11 = inlined_call_operand.vmem [shape: f32[2,1,32], index: 11, kind: input, shape index: {}]   ;;  %s6795_s12 = inlined_call_operand.vmem [shape: f32[2,1,32], index: 12, kind: input, shape index: {}]   ;;  %s6796_s13 = inlined_call_operand.vmem [shape: f32[2,1,32], index: 13, kind: input, shape index: {}]   ;;  %s6797_s14 = inlined_call_operand.vmem [shape: bf16[2,32,2048], index: 14, kind: input, shape index: {}]   ;;  %s6798_s15 = inlined_call_operand.vmem [shape: f32[2,1,2048], index: 15, kind: input, shape index: {}]   ;;  %s6799_s16 = inlined_call_operand.vmem [shape: bf16[2,2048,32], index: 16, kind: input, shape index: {}]   ;;  %s6800_s17 = inlined_call_operand.vmem [shape: f32[2,1,32], index: 17, kind: input, shape index: {}]   ;;  %s6801_s18 = inlined_call_operand.vmem [shape: f32[1,32], index: 18, kind: input, shape index: {}]   ;;  %s6802_s19 = inlined_call_operand.vmem [shape: f32[1,32], index: 19, kind: input, shape index: {}]   ;;  %s6803_s20 = inlined_call_operand.vmem [shape: bf16[160,160], index: 20, kind: input, shape index: {}]   ;;  %s6804_s21 = inlined_call_operand.vmem [shape: f32[1,160], index: 21, kind: input, shape index: {}]   ;;  %s6805_s22 = inlined_call_operand.vmem [shape: bf16[160,160], index: 22, kind: input, shape index: {}]   ;;  %s6806_s23 = inlined_call_operand.vmem [shape: f32[1,160], index: 23, kind: input, shape index: {}]   ;;  %s6807_s24 = inlined_call_operand.vmem [shape: bf16[160,128], index: 24, kind: input, shape index: {}]   ;;  %s6808_s25 = inlined_call_operand.vmem [shape: f32[1,128], index: 25, kind: input, shape index: {}]   ;;  %s6809_s26 = inlined_call_operand.hbm [shape: f32[2,128], index: 26, kind: output, shape index: {}]  }
   0x1   :  { %6820 = sst [smem:[#allocation7_spill]] %s6783_s0 }
   0x2   :  { %6821 = sst [smem:[#allocation8_spill]] %s6784_s1 }
   0x3   :  { %6822 = sst [smem:[#allocation9_spill]] %s6785_s2 }
   0x4   :  { %6823 = sst [smem:[#allocation10_spill]] %s6786_s3 }
   0x5   :  { %6824 = sst [smem:[#allocation11_spill]] %s6787_s4 }
   0x6   :  { %6825 = sst [smem:[#allocation12_spill]] %s6788_s5 }
   0x7   :  { %6826 = sst [smem:[#allocation13_spill]] %s6789_s6 }
   0x8   :  { %6827 = sst [smem:[#allocation14_spill]] %s6790_s7 }
   0x9   :  { %6828 = sst [smem:[#allocation15_spill]] %s6791_s8 }
   0xa   :  { %6829 = sst [smem:[#allocation16_spill]] %s6792_s9 }
   0xb   :  { %6830 = sst [smem:[#allocation17_spill]] %s6793_s10 }
   0xc   :  { %6831 = sst [smem:[#allocation18_spill]] %s6804_s21 }
   0xd   :  { %6832 = sst [smem:[#allocation19_spill]] %s6805_s22 }
   0xe   :  { %6833 = sst [smem:[#allocation20_spill]] %s6806_s23 }
   0xf   :  { %6834 = sst [smem:[#allocation21_spill]] %s6807_s24 }
  0x10   :  { %6835 = sst [smem:[#allocation22_spill]] %s6808_s25 }
  0x11   :  { %6836 = sst [smem:[#allocation23_spill]] %s6809_s26 }
  0x12   :  { %31 = vsyncpa [#allocation4], 0  ;;  %s5745_s27 = smov 0  }
  0x13 LB: > { %6837 = sst [smem:[#allocation6_spill]] %s5597_s27  ;;  %s5751_s3 = sadd.s32 4294967295, %s5597_s27   ;;  %s5597_s27 = sphi %s5745_s27, %s37_s27  }
  0x14   : > { %p4589_p0 = scmp.ge.s32.totalorder %s5597_s27, 1  ;;  %p803_p1 = scmp.lt.s32.totalorder %s5597_s27, 3 }
  0x16   : > { %p804_p2 = pnand %p4589_p0, %p803_p1 }
  0x17   : > { %p908_p3 = scmp.lt.s32.totalorder (!%p804_p2), %s5751_s3, 1  ;;  %s6841_s26 = sld [smem:[#allocation15_spill]] (!%p804_p2) }
  0x18   : > { %807 = sbr.rel (%p804_p2) target bundleno = 4027 (0xfbb), region = 124  ;;  %s6842_s24 = sld [smem:[#allocation17_spill]] (!%p804_p2) }
  0x19   : > { %p4599_p4 = scmp.ne.s32.totalorder (!%p804_p2), %s5751_s3, 0 }
  0x1f   : > { %s5757_s7 = scalar_select %p908_p3, %s5751_s3, 1 }
  0x20   : > { %957 = sbr.rel (%p4599_p4) target bundleno = 297 (0x129), region = 128  ;;  %s6844_s23 = sld [smem:[#allocation7_spill]] (!%p4599_p4)  ;;  %vm1071_vm0 = vcmask (!%p4599_p4), 261120   ;;  %vm1073_vm1 = vcmask (!%p4599_p4), 254976  }
  0x21   : > { %s4854_s5 = sshll.u32 %s5757_s7, 4  ;;  %s935_s1 = scalar_lea.vmem %s6796_s13, %s5757_s7 }
  0x22   : > { %s5775_s25 = scalar_lea.vmem %s6841_s26, %s4854_s5  ;;  %s5780_s22 = scalar_lea.vmem %s6842_s24, %s4854_s5 }
  0x23   : > { %s4856_s28 = sshll.u32 %s5757_s7, 8  ;;  %s5803_s24 = scalar_lea.vmem %s6798_s15, %s4854_s5 }
  0x24   : > { %s5798_s27 = scalar_lea.vmem %s6797_s14, %s4856_s28  ;;  %s4857_s29 = sshll.u32 %s5757_s7, 10 }
  0x25   : > { %s5813_s10 = scalar_lea.vmem %s6799_s16, %s4857_s29  ;;  %s6843_s26 = sld [smem:[#allocation8_spill]] (!%p4599_p4) }
  0x26   : > { %v959_v25 = vld [vmem:[%s6844_s23 + $0x8] sm:$0xff] (!%p4599_p4)  ;;  %v961_v26 = vld [vmem:[%s6844_s23 + $0x18] sm:$0x3] (!%p4599_p4)  ;;  %v958_v50 = vld [vmem:[%s6844_s23] sm:$0xff] (!%p4599_p4)  ;;  %s6845_s29 = sld [smem:[#allocation9_spill]] (!%p4599_p4) }
  0x27   : > { %1060 = vmatprep.mubr.f32.mxu0 %v959_v25  ;;  %1065 = vmatprep.mubr.f32.mxu1 %v961_v26  ;;  %v960_v51 = vld [vmem:[%s6844_s23 + $0x10] sm:$0x3] }
  0x2b   : > { %v978_v0 = vld [vmem:[%s6843_s26 + $0x80] sm:$0xff]  ;;  %v979_v1 = vld [vmem:[%s6843_s26 + $0x88] sm:$0xff]  ;;  %v980_v5 = vld [vmem:[%s6843_s26 + $0x90] sm:$0xff] }
  0x2c   : > { %v962_v2 = vld [vmem:[%s6843_s26] sm:$0xff]  ;;  %v5154_v3 = vpack.c.bf16 %v979_v1, %v978_v0  ;;  %v963_v4 = vld [vmem:[%s6843_s26 + $0x8] sm:$0xff]  ;;  %v981_v6 = vld [vmem:[%s6843_s26 + $0x98] sm:$0xff] }
  0x2d   : > { %v5156_v7 = vpack.c.bf16 %v963_v4, %v962_v2  ;;  %v5158_v8 = vpack.c.bf16 %v981_v6, %v980_v5  ;;  %v964_v9 = vld [vmem:[%s6843_s26 + $0x10] sm:$0xff]  ;;  %v965_v10 = vld [vmem:[%s6843_s26 + $0x18] sm:$0xff]  ;;  %v982_v11 = vld [vmem:[%s6843_s26 + $0xa0] sm:$0xff] }
  0x2e   : > { %5155 = vmatprep.subr.bf16.mxu0 %v5154_v3  ;;  %5214 = vmatprep.subr.bf16.mxu1 %v5154_v3  ;;  %v983_v12 = vld [vmem:[%s6843_s26 + $0xa8] sm:$0xff]  ;;  %v5160_v13 = vpack.c.bf16 %v965_v10, %v964_v9  ;;  %v966_v15 = vld [vmem:[%s6843_s26 + $0x20] sm:$0xff]  ;;  %v984_v17 = vld [vmem:[%s6843_s26 + $0xb0] sm:$0xff] }
  0x2f   : > { %5157 = vmatpush3.bf16.msra.mxu0 %v5156_v7  ;;  %5222 = vmatpush3.bf16.msra.mxu1 %v5156_v7  ;;  %v5162_v14 = vpack.c.bf16 %v983_v12, %v982_v11  ;;  %v967_v16 = vld [vmem:[%s6843_s26 + $0x28] sm:$0xff]  ;;  %v985_v18 = vld [vmem:[%s6843_s26 + $0xb8] sm:$0xff]  ;;  %v968_v21 = vld [vmem:[%s6843_s26 + $0x30] sm:$0xff] }
  0x30   : > { %5159 = vmatprep.subr.bf16.mxu0 %v5158_v8  ;;  %5215 = vmatprep.subr.bf16.mxu1 %v5158_v8  ;;  %v5164_v19 = vpack.c.bf16 %v967_v16, %v966_v15  ;;  %v5166_v20 = vpack.c.bf16 %v985_v18, %v984_v17  ;;  %v969_v22 = vld [vmem:[%s6843_s26 + $0x38] sm:$0xff]  ;;  %v986_v23 = vld [vmem:[%s6843_s26 + $0xc0] sm:$0xff]  ;;  %v987_v24 = vld [vmem:[%s6843_s26 + $0xc8] sm:$0xff] }
  0x31   : > { %v5168_v27 = vpack.c.bf16 %v969_v22, %v968_v21  ;;  %v5170_v28 = vpack.c.bf16 %v987_v24, %v986_v23  ;;  %v970_v29 = vld [vmem:[%s6843_s26 + $0x40] sm:$0xff]  ;;  %v971_v30 = vld [vmem:[%s6843_s26 + $0x48] sm:$0xff]  ;;  %v988_v31 = vld [vmem:[%s6843_s26 + $0xd0] sm:$0xff] }
  0x32   : > { %v989_v32 = vld [vmem:[%s6843_s26 + $0xd8] sm:$0xff]  ;;  %v5172_v33 = vpack.c.bf16 %v971_v30, %v970_v29  ;;  %v972_v35 = vld [vmem:[%s6843_s26 + $0x50] sm:$0xff]  ;;  %v990_v37 = vld [vmem:[%s6843_s26 + $0xe0] sm:$0xff] }
  0x33   : > { %5161 = vmatpush3.bf16.msra.mxu0 %v5160_v13  ;;  %5223 = vmatpush3.bf16.msra.mxu1 %v5160_v13  ;;  %v5174_v34 = vpack.c.bf16 %v989_v32, %v988_v31  ;;  %v973_v36 = vld [vmem:[%s6843_s26 + $0x58] sm:$0xff]  ;;  %v991_v38 = vld [vmem:[%s6843_s26 + $0xe8] sm:$0xff]  ;;  %v974_v41 = vld [vmem:[%s6843_s26 + $0x60] sm:$0xff] }
  0x34   : > { %5163 = vmatprep.subr.bf16.mxu0 %v5162_v14  ;;  %5216 = vmatprep.subr.bf16.mxu1 %v5162_v14  ;;  %v5176_v39 = vpack.c.bf16 %v973_v36, %v972_v35  ;;  %v5178_v40 = vpack.c.bf16 %v991_v38, %v990_v37  ;;  %v975_v42 = vld [vmem:[%s6843_s26 + $0x68] sm:$0xff]  ;;  %v992_v43 = vld [vmem:[%s6843_s26 + $0xf0] sm:$0xff]  ;;  %v993_v44 = vld [vmem:[%s6843_s26 + $0xf8] sm:$0xff] }
  0x35   : > { %v5180_v45 = vpack.c.bf16 %v975_v42, %v974_v41  ;;  %v5182_v46 = vpack.c.bf16 %v993_v44, %v992_v43  ;;  %v976_v47 = vld [vmem:[%s6843_s26 + $0x70] sm:$0xff]  ;;  %v977_v48 = vld [vmem:[%s6843_s26 + $0x78] sm:$0xff]  ;;  %v994_v54 = vld [vmem:[%s6845_s29] sm:$0xff] }
  0x36   : > { %v5184_v49 = vpack.c.bf16 %v977_v48, %v976_v47  ;;  %v995_v56 = vld [vmem:[%s6845_s29 + $0x8] sm:$0x3] }
  0x37   : > { %5165 = vmatpush3.bf16.msra.mxu0 %v5164_v19  ;;  %5224 = vmatpush3.bf16.msra.mxu1 %v5164_v19 }
  0x38   : > { %5167 = vmatprep.subr.bf16.mxu0 %v5166_v20  ;;  %5217 = vmatprep.subr.bf16.mxu1 %v5166_v20 }
  0x3b   : > { %5169 = vmatpush3.bf16.msra.mxu0 %v5168_v27  ;;  %5225 = vmatpush3.bf16.msra.mxu1 %v5168_v27 }
  0x3c   : > { %5171 = vmatprep.subr.bf16.mxu0 %v5170_v28  ;;  %5218 = vmatprep.subr.bf16.mxu1 %v5170_v28 }
  0x3f   : > { %5173 = vmatpush3.bf16.msra.mxu0 %v5172_v33  ;;  %5226 = vmatpush3.bf16.msra.mxu1 %v5172_v33 }
  0x40   : > { %5175 = vmatprep.subr.bf16.mxu0 %v5174_v34  ;;  %5219 = vmatprep.subr.bf16.mxu1 %v5174_v34 }
  0x43   : > { %5177 = vmatpush3.bf16.msra.mxu0 %v5176_v39  ;;  %5227 = vmatpush3.bf16.msra.mxu1 %v5176_v39 }
  0x44   : > { %5179 = vmatprep.subr.bf16.mxu0 %v5178_v40  ;;  %5220 = vmatprep.subr.bf16.mxu1 %v5178_v40 }
  0x47   : > { %5181 = vmatpush3.bf16.msra.mxu0 %v5180_v45  ;;  %5228 = vmatpush3.bf16.msra.mxu1 %v5180_v45 }
  0x48   : > { %5183 = vmatprep.subr.bf16.mxu0 %v5182_v46  ;;  %5221 = vmatprep.subr.bf16.mxu1 %v5182_v46 }
  0x4b   : > { %5185 = vmatpush3.bf16.msra.mxu0 %v5184_v49  ;;  %5229 = vmatpush3.bf16.msra.mxu1 %v5184_v49 }
  0x4e   : > { %1061 = vmatmul.mubr.f32.vlgmr.msra.gmra.mrb[0].mxu0 %v958_v50  ;;  %1066 = vmatmul.mubr.f32.vlgmr.msra.gmra.mrb[0].mxu1 %v960_v51 }
 0x121   : > { %v4890_v52 = vpop.f32.mrb[0].mxu0  ;;  %v4893_v53 = vpop.f32.mrb[0].mxu1 }
 0x122   : > { %v4891_v55 = vpop.f32.mrb[1].mxu0  ;;  %v4894_v57 = vpop.f32.mrb[1].mxu1 }
 0x123   : > { %v4892_v58 = vadd.f32 %v4891_v55, %v4890_v52  ;;  %v4895_v59 = vadd.f32 %v4894_v57, %v4893_v53 }
 0x125   : > { %v1063_v60 = vadd.f32 %v4892_v58, %v994_v54  ;;  %v1068_v61 = vadd.f32 %v4895_v59, %v995_v56 }
 0x127   : > { %1072 = vst.msk [vmem:[#allocation2] sm:$0xff] %vm1071_vm0, %v1063_v60 }
 0x128   : > { %1074 = vst.msk [vmem:[#allocation2 + $0x8] sm:$0x3] %vm1073_vm1, %v1068_v61 }
 0x129 PF: > { %vm1079_vm2 = vcmask 261120   ;;  %vm1083_vm3 = vcmask 254976   ;;  %v5275_v12 = vld [vmem:[%s5775_s25] sm:$0xff]   ;;  %v5599_v13 = vmov 0.0   ;;  %v5276_v14 = vld [vmem:[%s5775_s25 + $0x8] sm:$0xff]   ;;  %vm5600_vm4 = vmmov 0  }
 0x12a   : > { %5099 = vmatprep.subr.bf16.mxu0 %v5599_v13  ;;  %5103 = vmatprep.mubr.msk.bf16.mxu0 %vm5600_vm4, %v5599_v13  ;;  %s6846_s9 = sld [smem:[#allocation10_spill]]  ;;  %s5601_s21 = smov 32   ;;  %vm1201_vm5 = vcmask 1041408   ;;  %vm1207_vm6 = vcmask 1043456   ;;  %vm1213_vm7 = vcmask 1045504   ;;  %vm5187_vm8 = vmpackc.low %vm1079_vm2, %vm1079_vm2  ;;  %vm1379_vm9 = vcmask 320512  }
 0x12b   : > { %5100 = vmatpush3.bf16.msra.mxu0 %v5275_v12  ;;  %s6847_s5 = sld [smem:[#allocation13_spill]]  ;;  %s6849_s2 = sld [smem:[#allocation14_spill]]  ;;  %vm1375_vm10 = vcmask 326656  }
 0x12c   : > { %5101 = vmatprep.subr.bf16.mxu0 %v5599_v13  ;;  %s6851_s28 = sld [smem:[#allocation16_spill]]  ;;  %s6853_s0 = sld [smem:[#allocation11_spill]] }
 0x12d   : > { %s5603_s30 = smov 64   ;;  %p4792_p5 = scmp.ne.s32.totalorder %s5751_s3, 1 }
 0x12e   : > { %v5930_v62 = vld [vmem:[#allocation2] sm:$0xff]  ;;  %vm3937_vm11 = vcmask (!%p4792_p5), 1040384   ;;  %vm3921_vm12 = vcmask (!%p4792_p5), 523264   ;;  %vm3923_vm13 = vcmask (!%p4792_p5), 785408   ;;  %s6860_s6 = sld [smem:[#allocation21_spill]] (!%p4792_p5) }
 0x12f   : > { %v5932_v63 = vld [vmem:[#allocation2 + $0x8] sm:$0x3]  ;;  %v1080_v0 = vsel %vm1079_vm2, %v5930_v62, 0.0  ;;  %5102 = vmatpush3.bf16.msra.mxu0 %v5276_v14 }
 0x130   : > { %v1084_v1 = vsel %vm1083_vm3, %v5932_v63, 0.0  ;;  %1081 = vadd.xlane.f32.xlu0 %v1080_v0  ;;  %v5951_v15 = vld [vmem:[%s6846_s9 + $0x8] sm:$0xff]  ;;  %v5956_v16 = vld [vmem:[%s6846_s9] sm:$0xff]  ;;  %v5963_v17 = vld [vmem:[%s6846_s9 + $0x10] sm:$0xff] }
 0x131   : > { %v5968_v18 = vld [vmem:[%s6846_s9 + $0x20] sm:$0xff]  ;;  %v5975_v19 = vld [vmem:[%s6846_s9 + $0x18] sm:$0xff]  ;;  %s6848_s25 = scalar_lea.vmem %s6847_s5, %s5757_s7  ;;  %s6850_s4 = scalar_lea.vmem %s6849_s2, %s5757_s7 }
 0x132   : > { %v4600_v28 = vld [vmem:[%s6848_s25] ss:$0 sm:$0xff]  ;;  %s6852_s8 = scalar_lea.vmem %s6851_s28, %s5757_s7  ;;  %s5602_s5 = smov 96  }
 0x133   : > { %v4601_v32 = vld [vmem:[%s6850_s4] ss:$0 sm:$0xff]  ;;  %s6856_s4 = scalar_lea.vmem %s6795_s12, %s5757_s7  ;;  %s6859_s25 = sld [smem:[#allocation19_spill]] (!%p4792_p5) }
 0x134   : > { %1085 = vadd.xlane.f32.xlu0 %v1084_v1  ;;  %v4602_v38 = vld [vmem:[%s6852_s8] ss:$0 sm:$0xff]  ;;  %s6854_s8 = sld [smem:[#allocation12_spill]]  ;;  %s5605_s2 = smov (!%p4792_p5), 64  }
 0x14a   : > { %1227 = vrot.lane.b32.xlu0 %v5956_v16, %s5601_s21 }
 0x14e   : > { %1235 = vrot.lane.b32.xlu0 %v5968_v18, %s5601_s21 }
 0x1bd   : > { %v1082_v2 = vpop.xlane.xlu0 %1081 }
 0x1be   : > { %v1088_v3 = vmul.f32 0.03125, %v1082_v2 }
 0x1c0   : > { %v1090_v4 = vsub.f32 %v5930_v62, %v1088_v3 }
 0x1c1   : > { %v1086_v5 = vpop.xlane.xlu0 %1085 }
 0x1c2   : > { %v1089_v6 = vmul.f32 0.03125, %v1086_v5  ;;  %v1092_v7 = vmul.f32 %v1090_v4, %v1090_v4 }
 0x1c4   : > { %v1091_v8 = vsub.f32 %v5932_v63, %v1089_v6  ;;  %v1094_v9 = vsel %vm1079_vm2, %v1092_v7, 0.0 }
 0x1c5   : > { %1095 = vadd.xlane.f32.xlu1 %v1094_v9  ;;  %v1228_v46 = vpop.permute.xlu0 %1227 }
 0x1c6   : > { %v1093_v10 = vmul.f32 %v1091_v8, %v1091_v8 }
 0x1c8   : > { %v1097_v11 = vsel %vm1083_vm3, %v1093_v10, 0.0 }
 0x1c9   : > { %1098 = vadd.xlane.f32.xlu1 %v1097_v11  ;;  %v1236_v3 = vpop.permute.xlu0 %1235 }
 0x1da   : > { %1229 = vrot.lane.b32.xlu1 %v5951_v15, %s5601_s21 }
 0x1de   : > { %1231 = vrot.lane.b32.xlu1 %v5963_v17, %s5601_s21 }
 0x1e2   : > { %1233 = vrot.lane.b32.xlu1 %v5975_v19, %s5601_s21  ;;  %s6855_s21 = scalar_lea.vmem %s6794_s11, %s5757_s7 }
 0x252   : > { %v1096_v20 = vpop.xlane.xlu1 %1095 }
 0x253   : > { %v1100_v21 = vmul.f32 0.03125, %v1096_v20 }
 0x255   : > { %v1102_v22 = vadd.f32 1e-06, %v1100_v21 }
 0x256   : > { %v1099_v23 = vpop.xlane.xlu1 %1098 }
 0x257   : > { %5407 = vrsqrt.f32 %v1102_v22  ;;  %v1101_v24 = vmul.f32 0.03125, %v1099_v23  ;;  %v1268_v23 = vld [vmem:[%s6853_s0 + $0x8] sm:$0x3] }
 0x259   : > { %v1103_v25 = vadd.f32 1e-06, %v1101_v24  ;;  %v1267_v24 = vld [vmem:[%s6853_s0] sm:$0xff] }
 0x25a   : > { %v1230_v37 = vpop.permute.xlu1 %1229 }
 0x25b   : > { %5409 = vrsqrt.f32 %v1103_v25 }
 0x25e   : > { %v1232_v40 = vpop.permute.xlu1 %1231 }
 0x261   : > { %v5408_v26 = vpop.eup %5407 }
 0x262   : > { %v1106_v27 = vmul.f32 %v5408_v26, %v1090_v4  ;;  %v1234_v57 = vpop.permute.xlu1 %1233 }
 0x264   : > { %v1114_v31 = vmul.f32 %v4600_v28, %v1106_v27 }
 0x265   : > { %v5410_v29 = vpop.eup %5409 }
 0x266   : > { %v1107_v30 = vmul.f32 %v5410_v29, %v1091_v8  ;;  %v1122_v34 = vadd.f32 %v4601_v32, %v1114_v31  ;;  %v1389_v31 = vld [vmem:[%s6854_s8] sm:$0xff] }
 0x268   : > { %v1115_v33 = vmul.f32 %v4600_v28, %v1107_v30 }
 0x26a   : > { %v1123_v35 = vadd.f32 %v4601_v32, %v1115_v33  ;;  %v1390_v32 = vld [vmem:[%s6854_s8 + $0x8] sm:$0xff] }
 0x26b   : > { %v5198_v33 = vpack.c.bf16 %v1390_v32, %v1389_v31 }
 0x26c   : > { %v1124_v36 = vpack.c.bf16 %v1123_v35, %v1122_v34  ;;  %v1392_v34 = vld [vmem:[%s6854_s8 + $0x18] sm:$0xff] }
 0x26d   : > { %5199 = vmatprep.subr.bf16.mxu0 %v5198_v33 }
 0x26e   : > { %5104 = vmatmul.mubr.msk.bf16.vlgmr.msra.gmra.mrb[0].mxu0 %vm1079_vm2, %v1124_v36 }
 0x26f   : > { %5201 = vmatpush3.bf16.msra.mxu0 %v5198_v33 }
 0x341   : > { %v1185_v39 = vpop.f32.mrb[0].mxu0 }
 0x342   : > { %v5994_v41 = vadd.f32 %v4602_v38, %v1185_v39  ;;  %v5105_v42 = vpop.f32.mrb[1].mxu0 }
 0x343   : > { %v1188_v43 = vpop.f32.mrb[2].mxu0 }
 0x344   : > { %v1189_v44 = vadd.f32 %v4602_v38, %v1188_v43  ;;  %v1202_v45 = vrot.slane %v5994_v41, 6  ;;  %v5106_v47 = vpop.f32.mrb[3].mxu0  ;;  %v1208_v48 = vrot.slane %v5994_v41, 4  ;;  %v1192_v49 = vmul.f32 0.35355338, %v5994_v41 }
 0x345   : > { %v1242_v55 = vmul.f32 %v1228_v46, %v5994_v41  ;;  %v1214_v56 = vrot.slane %v5994_v41, 2 }
 0x346   : > { %v6000_v50 = vsel %vm1201_vm5, %v1189_v44, %v1202_v45  ;;  %v1203_v51 = vrot.slane %v1189_v44, 6  ;;  %v1215_v52 = vrot.slane %v1189_v44, 2  ;;  %v1209_v53 = vrot.slane %v1189_v44, 4  ;;  %5117 = vmatprep.mubr.msk.f32.mxu1 %vm1079_vm2, %v1192_v49 }
 0x347   : > { %v1243_v54 = vmul.f32 %v1230_v37, %v6000_v50  ;;  %v1193_v22 = vmul.f32 0.35355338, %v1189_v44 }
 0x348   : > { %v1204_v58 = vsel %vm1201_vm5, %v1202_v45, %v1203_v51  ;;  %v1210_v59 = vsel %vm1207_vm6, %v1208_v48, %v1209_v53  ;;  %v6016_v2 = vsel %vm1213_vm7, %v1214_v56, %v1215_v52  ;;  %v5277_v53 = vld [vmem:[%s5780_s22] sm:$0xff]  }
 0x349   : > { %v5255_v60 = vpack.i.bf16 %v1243_v54, %v1242_v55  ;;  %v6009_v61 = vsel %vm1207_vm6, %v1204_v58, %v1208_v48  ;;  %v6012_v0 = vsel %vm1213_vm7, %v1210_v59, %v1214_v56  ;;  %v1246_v6 = vmul.f32 %v1236_v3, %v6016_v2 }
 0x34a   : > { %v1244_v1 = vmul.f32 %v1232_v40, %v6009_v61  ;;  %v1245_v4 = vmul.f32 %v1234_v57, %v6012_v0 }
 0x34b   : > { %5256 = vrot.lane.b32.xlu1 %v5255_v60, %s5602_s5 }
 0x34c   : > { %v5260_v5 = vpack.i.bf16 %v1245_v4, %v1244_v1 }
 0x34e   : > { %5261 = vrot.lane.b32.xlu0 %v5260_v5, %s5602_s5 }
 0x34f   : > { %1282 = vrot.lane.b32.xlu1 %v1246_v6, %s5602_s5  ;;  %v5278_v6 = vld [vmem:[%s5780_s22 + $0x8] sm:$0xff]  }
 0x3bd   : > { %v5257_v7 = vpop.permute.xlu1 %5256 }
 0x3be   : > { %v5259_v8 = vunpack.i.h.bf16 %v5257_v7  ;;  %v5258_v9 = vunpack.i.l.bf16 %v5257_v7 }
 0x3c0   : > { %v5262_v10 = vpop.permute.xlu0 %5261  ;;  %v5186_v11 = vpack.c.bf16 %v5259_v8, %v5258_v9 }
 0x3c1   : > { %v5264_v12 = vunpack.i.h.bf16 %v5262_v10  ;;  %v5263_v14 = vunpack.i.l.bf16 %v5262_v10  ;;  %v1283_v21 = vpop.permute.xlu1 %1282  ;;  %v4617_v10 = vld [vmem:[%s6855_s21] ss:$0 sm:$0xff] }
 0x3c2   : > { %5188 = vmatprep.subr.msk.bf16.mxu1 %vm5187_vm8, %v5186_v11 }
 0x3c3   : > { %v5192_v20 = vpack.c.bf16 %v5264_v12, %v5263_v14  ;;  %5191 = vmatpush3.bf16.xpose.msk.msra.mxu1 %vm5187_vm8, %v5186_v11 }
 0x3c5   : > { %5194 = vmatprep.subr.msk.bf16.mxu1 %vm5187_vm8, %v5192_v20 }
 0x3cb   : > { %5197 = vmatpush3.bf16.xpose.msk.msra.mxu1 %vm5187_vm8, %v5192_v20 }
 0x3cc   : > { %5115 = vmatprep.subr.msk.mxu1 %vm1079_vm2, %v1283_v21 }
 0x3d3   : > { %5116 = vmatpush3.xpose.msk.msra.mxu1 %vm1079_vm2, %v1283_v21 }
 0x3d4   : > { %5146 = vmatprep.subr.bf16.mxu1 %v5599_v13 }
 0x3d6   : > { %5118 = vmatmul.mubr.msk.f32.vlgmr.msra.gmra.mrb[0].mxu1 %vm1079_vm2, %v1193_v22 }
 0x3d7   : > { %5150 = vmatprep.mubr.msk.bf16.mxu1 %vm5600_vm4, %v5599_v13  ;;  %5147 = vmatpush3.bf16.msra.mxu1 %v5277_v53 }
 0x3d8   : > { %5148 = vmatprep.subr.bf16.mxu1 %v5599_v13 }
 0x3db   : > { %5149 = vmatpush3.bf16.msra.mxu1 %v5278_v6  ;;  %v1713_v6 = vld [vmem:[%s5798_s27 + $0x90] sm:$0xff] }
 0x4a9   : > { %v5119_v25 = vpop.f32.mrb[0].mxu1 }
 0x4aa   : > { %v1372_v26 = vadd.f32 %v5119_v25, %v1268_v23  ;;  %v1366_v27 = vpop.f32.mrb[1].mxu1 }
 0x4ab   : > { %v1367_v28 = vadd.f32 %v1366_v27, %v1267_v24 }
 0x4ac   : > { %v1380_v29 = vsel %vm1379_vm9, %v1372_v26, -inf }
 0x4ad   : > { %1381 = vmax.xlane.f32.xlu1 %v1380_v29  ;;  %v1376_v30 = vsel %vm1375_vm10, %v1367_v28, -inf }
 0x4ae   : > { %1377 = vmax.xlane.f32.xlu0 %v1376_v30 }
 0x4be   : > { %1249 = vrot.lane.b32.xlu1 %v5951_v15, %s5603_s30  ;;  %v1391_v15 = vld [vmem:[%s6854_s8 + $0x10] sm:$0xff] }
 0x4bf   : > { %v5202_v35 = vpack.c.bf16 %v1392_v34, %v1391_v15  ;;  %v1695_v34 = vld [vmem:[%s5798_s27] sm:$0xff] }
 0x4c1   : > { %5203 = vmatprep.subr.bf16.mxu0 %v5202_v35 }
 0x4c2   : > { %1253 = vrot.lane.b32.xlu1 %v5975_v19, %s5603_s30  ;;  %5205 = vmatpush3.bf16.msra.mxu0 %v5202_v35  ;;  %v1393_v19 = vld [vmem:[%s6854_s8 + $0x20] sm:$0xff] }
 0x4c3   : > { %5128 = vmatprep.subr.mxu0 %v1393_v19  ;;  %v1703_v35 = vld [vmem:[%s5798_s27 + $0x40] sm:$0xff] }
 0x4c4   : > { %1247 = vrot.lane.b32.xlu0 %v5956_v16, %s5603_s30 }
 0x4c6   : > { %5129 = vmatpush3.msra.mxu0 %v1393_v19  ;;  %v1696_v19 = vld [vmem:[%s5798_s27 + $0x8] sm:$0xff] }
 0x4c8   : > { %1251 = vrot.lane.b32.xlu0 %v5963_v17, %s5603_s30 }
 0x4cc   : > { %1255 = vrot.lane.b32.xlu0 %v5968_v18, %s5603_s30 }
 0x53a   : > { %v1382_v16 = vpop.xlane.xlu1 %1381 }
 0x53b   : > { %v1384_v36 = vsub.f32 %v1372_v26, %v1382_v16  ;;  %v1378_v37 = vpop.xlane.xlu0 %1377  ;;  %v4624_v16 = vcombine.high %v1695_v34, %v1703_v35 }
 0x53c   : > { %v1383_v38 = vsub.f32 %v1367_v28, %v1378_v37  ;;  %v4623_v37 = vcombine.low %v1695_v34, %v1703_v35 }
 0x53d   : > { %v1387_v39 = vmul.f32 1.442695, %v1384_v36  ;;  %v1704_v36 = vld [vmem:[%s5798_s27 + $0x48] sm:$0xff] }
 0x53e   : > { %v1385_v40 = vmul.f32 1.442695, %v1383_v38  ;;  %v1250_v42 = vpop.permute.xlu1 %1249  ;;  %v4625_v38 = vcombine.low %v1696_v19, %v1704_v36 }
 0x53f   : > { %v1263_v43 = vmul.f32 %v1250_v42, %v6000_v50  ;;  %v1248_v17 = vpop.permute.xlu0 %1247  ;;  %v1719_v42 = vld [vmem:[%s5798_s27 + $0xc0] sm:$0xff] }
 0x540   : > { %5411 = vpow2.f32 %v1385_v40  ;;  %v1262_v44 = vmul.f32 %v1248_v17, %v5994_v41  ;;  %v1711_v40 = vld [vmem:[%s5798_s27 + $0x80] sm:$0xff] }
 0x541   : > { %5413 = vpow2.f32 %v1387_v39  ;;  %v4626_v39 = vcombine.high %v1696_v19, %v1704_v36  ;;  %v4640_v17 = vcombine.high %v1711_v40, %v1719_v42  ;;  %v1701_v19 = vld [vmem:[%s5798_s27 + $0x30] sm:$0xff]  ;;  %v1702_v36 = vld [vmem:[%s5798_s27 + $0x38] sm:$0xff] }
 0x542   : > { %v5265_v45 = vpack.i.bf16 %v1263_v43, %v1262_v44  ;;  %v1254_v46 = vpop.permute.xlu1 %1253  ;;  %v1712_v43 = vld [vmem:[%s5798_s27 + $0x88] sm:$0xff] }
 0x543   : > { %v1265_v18 = vmul.f32 %v1254_v46, %v6012_v0  ;;  %v1252_v47 = vpop.permute.xlu0 %1251  ;;  %2017 = vmatprep.subr.bf16.mxu1 %v4626_v39  ;;  %v1720_v44 = vld [vmem:[%s5798_s27 + $0xc8] sm:$0xff] }
 0x544   : > { %v1264_v48 = vmul.f32 %v1252_v47, %v6009_v61  ;;  %5266 = vrot.lane.b32.xlu1 %v5265_v45, %s5603_s30  ;;  %v4639_v45 = vcombine.low %v1711_v40, %v1719_v42  ;;  %v4641_v46 = vcombine.low %v1712_v43, %v1720_v44  ;;  %v1697_v47 = vld [vmem:[%s5798_s27 + $0x10] sm:$0xff] }
 0x546   : > { %v5270_v49 = vpack.i.bf16 %v1265_v18, %v1264_v48  ;;  %v4642_v18 = vcombine.high %v1712_v43, %v1720_v44  ;;  %v1705_v48 = vld [vmem:[%s5798_s27 + $0x50] sm:$0xff]  ;;  %v1718_v44 = vld [vmem:[%s5798_s27 + $0xb8] sm:$0xff] }
 0x547   : > { %v1256_v51 = vpop.permute.xlu0 %1255  ;;  %v1717_v43 = vld [vmem:[%s5798_s27 + $0xb0] sm:$0xff] }
 0x548   : > { %v1266_v52 = vmul.f32 %v1256_v51, %v6016_v2  ;;  %5271 = vrot.lane.b32.xlu0 %v5270_v49, %s5603_s30  ;;  %v1698_v49 = vld [vmem:[%s5798_s27 + $0x18] sm:$0xff]  ;;  %v5604_v51 = vmov 0  }
 0x54a   : > { %v5412_v50 = vpop.eup %5411  ;;  %1492 = vrot.lane.b32.xlu1 %v1266_v52, %s5603_s30  ;;  %v4628_v52 = vcombine.high %v1697_v47, %v1705_v48 }
 0x54b   : > { %v5414_v41 = vpop.eup %5413  ;;  %5130 = vmatprep.mubr.msk.f32.mxu0 %vm1375_vm10, %v5412_v50 }
 0x54c   : > { %5131 = vmatmul.mubr.msk.f32.vlgmr.msra.gmra.mrb[4].mxu0 %vm1375_vm10, %v5414_v41 }
 0x5b6   : > { %v5267_v54 = vpop.permute.xlu1 %5266 }
 0x5b7   : > { %v5269_v55 = vunpack.i.h.bf16 %v5267_v54  ;;  %v5268_v56 = vunpack.i.l.bf16 %v5267_v54 }
 0x5b9   : > { %v5206_v57 = vpack.c.bf16 %v5269_v55, %v5268_v56 }
 0x5ba   : > { %v5272_v58 = vpop.permute.xlu0 %5271 }
 0x5bb   : > { %v5274_v59 = vunpack.i.h.bf16 %v5272_v58  ;;  %v5273_v60 = vunpack.i.l.bf16 %v5272_v58  ;;  %5207 = vmatprep.subr.bf16.mxu0 %v5206_v57 }
 0x5bc   : > { %5209 = vmatpush3.bf16.msra.mxu0 %v5206_v57  ;;  %v1493_v0 = vpop.permute.xlu1 %1492 }
 0x5bd   : > { %v5210_v61 = vpack.c.bf16 %v5274_v59, %v5273_v60 }
 0x5bf   : > { %5211 = vmatprep.subr.bf16.mxu0 %v5210_v61 }
 0x5c0   : > { %5213 = vmatpush3.bf16.msra.mxu0 %v5210_v61 }
 0x5c1   : > { %5141 = vmatprep.subr.mxu0 %v1493_v0 }
 0x5c4   : > { %5142 = vmatpush3.msra.mxu0 %v1493_v0 }
 0x5c5   : > { %1974 = vmatprep.subr.bf16.mxu0 %v4624_v16  ;;  %v1709_v16 = vld [vmem:[%s5798_s27 + $0x70] sm:$0xff] }
 0x5c6   : > { %v4636_v40 = vcombine.high %v1701_v19, %v1709_v16 }
 0x61f   : > { %v5132_v1 = vpop.f32.mrb[4].mxu0 }
 0x620   : > { %5415 = vrcp.f32 %v5132_v1  ;;  %v1466_v13 = vpop.f32.mrb[5].mxu0  ;;  %v4621_v1 = vld [vmem:[%s6856_s4] ss:$0 sm:$0xff]  ;;  %s5606_s4 = smov (!%p4792_p5), 32  }
 0x621   : > { %5417 = vrcp.f32 %v1466_v13 }
 0x62a   : > { %v5416_v2 = vpop.eup %5415 }
 0x62b   : > { %v5418_v3 = vpop.eup %5417  ;;  %v1478_v5 = vmul.f32 %v5416_v2, %v5414_v41  ;;  %v4627_v41 = vcombine.low %v1697_v47, %v1705_v48 }
 0x62c   : > { %v1477_v4 = vmul.f32 %v5418_v3, %v5412_v50  ;;  %v1706_v50 = vld [vmem:[%s5798_s27 + $0x58] sm:$0xff] }
 0x62d   : > { %v4629_v53 = vcombine.low %v1698_v49, %v1706_v50  ;;  %v4630_v54 = vcombine.high %v1698_v49, %v1706_v50  ;;  %v5279_v50 = vld [vmem:[%s5813_s10 + $0x40] sm:$0xff]  }
 0x62e   : > { %5143 = vmatprep.mubr.msk.f32.mxu0 %vm1375_vm10, %v1477_v4  ;;  %v4622_v4 = vld [vmem:[%s935_s1] ss:$0 sm:$0xff]  ;;  %s6863_s1 = sld [smem:[#allocation22_spill]] (!%p4792_p5) }
 0x62f   : > { %5144 = vmatmul.mubr.msk.f32.vlgmr.msra.gmra.mrb[6].mxu0 %vm1375_vm10, %v1478_v5 }
 0x630   : > { %1975 = vmatpush1.bf16.msra.mxu0 %v4623_v37  ;;  %2006 = vmatprep.mubr.bf16.mxu0 %v5604_v51  ;;  %v1710_v37 = vld [vmem:[%s5798_s27 + $0x78] sm:$0xff] }
 0x631   : > { %1976 = vmatprep.subr.bf16.mxu0 %v4640_v17  ;;  %v4638_v42 = vcombine.high %v1702_v36, %v1710_v37  ;;  %v1725_v17 = vld [vmem:[%s5798_s27 + $0xf0] sm:$0xff] }
 0x632   : > { %v4652_v47 = vcombine.high %v1717_v43, %v1725_v17  ;;  %v4651_v49 = vcombine.low %v1717_v43, %v1725_v17 }
 0x634   : > { %1977 = vmatpush1.bf16.msra.mxu0 %v4639_v45  ;;  %v1726_v45 = vld [vmem:[%s5798_s27 + $0xf8] sm:$0xff] }
 0x635   : > { %2060 = vmatprep.subr.bf16.mxu0 %v4628_v52  ;;  %v4654_v48 = vcombine.high %v1718_v44, %v1726_v45  ;;  %v4653_v52 = vcombine.low %v1718_v44, %v1726_v45 }
 0x702   : > { %v5145_v7 = vpop.f32.mrb[6].mxu0 }
 0x703   : > { %v1571_v8 = vpop.f32.mrb[7].mxu0 }
 0x704   : > { %v1580_v9 = vpack.c.bf16 %v5145_v7, %v1571_v8  ;;  %v1721_v7 = vld [vmem:[%s5798_s27 + $0xd0] sm:$0xff]  ;;  %v1714_v8 = vld [vmem:[%s5798_s27 + $0x98] sm:$0xff] }
 0x706   : > { %5151 = vmatmul.mubr.msk.bf16.vlgmr.msra.gmra.mrb[4].mxu1 %vm1079_vm2, %v1580_v9  ;;  %v1722_v9 = vld [vmem:[%s5798_s27 + $0xd8] sm:$0xff] }
 0x707   : > { %2018 = vmatpush1.bf16.msra.mxu1 %v4625_v38  ;;  %2049 = vmatprep.mubr.bf16.mxu1 %v5604_v51 }
 0x708   : > { %2019 = vmatprep.subr.bf16.mxu1 %v4642_v18  ;;  %v4637_v18 = vcombine.low %v1702_v36, %v1710_v37 }
 0x70b   : > { %2020 = vmatpush1.bf16.msra.mxu1 %v4641_v46  ;;  %v4635_v46 = vcombine.low %v1701_v19, %v1709_v16 }
 0x70c   : > { %2103 = vmatprep.subr.bf16.mxu1 %v4630_v54  ;;  %v5282_v54 = vld [vmem:[%s5813_s10 + $0x80] sm:$0xff]  }
 0x7d9   : > { %v1641_v11 = vpop.f32.mrb[4].mxu1 }
 0x7da   : > { %v1642_v12 = vadd.f32 %v4617_v10, %v1641_v11  ;;  %v5152_v14 = vpop.f32.mrb[5].mxu1 }
 0x7db   : > { %v1644_v20 = vpop.f32.mrb[6].mxu1  ;;  %v4644_v14 = vcombine.high %v1713_v6, %v1721_v7 }
 0x7dc   : > { %v6082_v21 = vadd.f32 %v1642_v12, %v5930_v62  ;;  %v1645_v22 = vadd.f32 %v4617_v10, %v1644_v20  ;;  %v5153_v23 = vpop.f32.mrb[7].mxu1  ;;  %v4646_v20 = vcombine.high %v1714_v8, %v1722_v9 }
 0x7dd   : > { %v1707_v23 = vld [vmem:[%s5798_s27 + $0x60] sm:$0xff] }
 0x7de   : > { %v6085_v24 = vadd.f32 %v1645_v22, %v5932_v63  ;;  %v1652_v25 = vsel %vm1079_vm2, %v6082_v21, 0.0  ;;  %v1699_v22 = vld [vmem:[%s5798_s27 + $0x20] sm:$0xff] }
 0x7df   : > { %1653 = vadd.xlane.f32.xlu0 %v1652_v25  ;;  %v1700_v25 = vld [vmem:[%s5798_s27 + $0x28] sm:$0xff] }
 0x7e0   : > { %v1655_v26 = vsel %vm1083_vm3, %v6085_v24, 0.0 }
 0x7e1   : > { %1656 = vadd.xlane.f32.xlu1 %v1655_v26  ;;  %v1708_v26 = vld [vmem:[%s5798_s27 + $0x68] sm:$0xff] }
 0x86c   : > { %v1654_v27 = vpop.xlane.xlu0 %1653 }
 0x86d   : > { %v1658_v62 = vmul.f32 0.03125, %v1654_v27  ;;  %v4643_v27 = vcombine.low %v1713_v6, %v1721_v7  ;;  %v5298_v6 = vld [vmem:[%s5813_s10 + $0xa0] sm:$0xff]   ;;  %v5299_v7 = vld [vmem:[%s5813_s10 + $0x68] sm:$0xff]  }
 0x86e   : > { %v1657_v28 = vpop.xlane.xlu1 %1656 }
 0x86f   : > { %v1660_v29 = vsub.f32 %v6082_v21, %v1658_v62  ;;  %v1659_v30 = vmul.f32 0.03125, %v1657_v28  ;;  %v4645_v62 = vcombine.low %v1714_v8, %v1722_v9  ;;  %v4632_v28 = vcombine.high %v1699_v22, %v1707_v23  ;;  %v5300_v8 = vld [vmem:[%s5813_s10 + $0xe8] sm:$0xff]  }
 0x870   : > { %v5301_v9 = vld [vmem:[%s5813_s10 + $0x28] sm:$0xff]  }
 0x871   : > { %v1661_v63 = vsub.f32 %v6085_v24, %v1659_v30  ;;  %v1662_v31 = vmul.f32 %v1660_v29, %v1660_v29  ;;  %v1715_v30 = vld [vmem:[%s5798_s27 + $0xa0] sm:$0xff] }
 0x873   : > { %v1664_v32 = vsel %vm1079_vm2, %v1662_v31, 0.0  ;;  %v1663_v33 = vmul.f32 %v1661_v63, %v1661_v63  ;;  %v1716_v31 = vld [vmem:[%s5798_s27 + $0xa8] sm:$0xff] }
 0x874   : > { %1665 = vadd.xlane.f32.xlu0 %v1664_v32  ;;  %v1724_v32 = vld [vmem:[%s5798_s27 + $0xe8] sm:$0xff] }
 0x875   : > { %v1667_v15 = vsel %vm1083_vm3, %v1663_v33, 0.0  ;;  %v4631_v33 = vcombine.low %v1699_v22, %v1707_v23  ;;  %v4650_v35 = vcombine.high %v1716_v31, %v1724_v32  ;;  %v4649_v39 = vcombine.low %v1716_v31, %v1724_v32  ;;  %v5307_v22 = vld [vmem:[%s5813_s10 + $0x78] sm:$0xff]   ;;  %v1727_v31 = vld [vmem:[%s5803_s24] sm:$0xff] }
 0x876   : > { %v5308_v23 = vld [vmem:[%s5813_s10 + $0xf8] sm:$0xff]  }
 0x878   : > { %1668 = vadd.xlane.f32.xlu0 %v1667_v15  ;;  %v4633_v15 = vcombine.low %v1700_v25, %v1708_v26 }
 0x901   : > { %v1666_v55 = vpop.xlane.xlu0 %1665 }
 0x902   : > { %v1670_v56 = vmul.f32 0.03125, %v1666_v55  ;;  %v5283_v55 = vld [vmem:[%s5813_s10 + $0x48] sm:$0xff]  }
 0x904   : > { %v1672_v57 = vadd.f32 1e-06, %v1670_v56  ;;  %v5284_v56 = vld [vmem:[%s5813_s10 + $0xc8] sm:$0xff]  }
 0x905   : > { %v1669_v58 = vpop.xlane.xlu0 %1668 }
 0x906   : > { %5419 = vrsqrt.f32 %v1672_v57  ;;  %v1671_v59 = vmul.f32 0.03125, %v1669_v58  ;;  %v5286_v57 = vld [vmem:[%s5813_s10 + $0x88] sm:$0xff]   ;;  %v5287_v58 = vld [vmem:[%s5813_s10 + $0x50] sm:$0xff]  }
 0x908   : > { %v1673_v60 = vadd.f32 1e-06, %v1671_v59  ;;  %v5288_v59 = vld [vmem:[%s5813_s10 + $0xd0] sm:$0xff]  }
 0x90a   : > { %5421 = vrsqrt.f32 %v1673_v60  ;;  %v5289_v60 = vld [vmem:[%s5813_s10 + $0x10] sm:$0xff]  }
 0x910   : > { %v5420_v61 = vpop.eup %5419 }
 0x911   : > { %v1676_v0 = vmul.f32 %v5420_v61, %v1660_v29  ;;  %v4634_v29 = vcombine.high %v1700_v25, %v1708_v26  ;;  %v5290_v61 = vld [vmem:[%s5813_s10 + $0x90] sm:$0xff]   ;;  %v5309_v25 = vld [vmem:[%s5813_s10 + $0x38] sm:$0xff]  }
 0x912   : > { %v5310_v26 = vld [vmem:[%s5813_s10 + $0xb8] sm:$0xff]  }
 0x913   : > { %v1684_v2 = vmul.f32 %v4621_v1, %v1676_v0  ;;  %v5291_v0 = vld [vmem:[%s5813_s10 + $0x58] sm:$0xff]  }
 0x914   : > { %v5422_v13 = vpop.eup %5421 }
 0x915   : > { %v1677_v3 = vmul.f32 %v5422_v13, %v1661_v63  ;;  %v1692_v10 = vadd.f32 %v4622_v4, %v1684_v2  ;;  %v1723_v63 = vld [vmem:[%s5798_s27 + $0xe0] sm:$0xff]  ;;  %v5293_v13 = vld [vmem:[%s5813_s10 + $0x18] sm:$0xff]  }
 0x916   : > { %v4648_v34 = vcombine.high %v1715_v30, %v1723_v63  ;;  %v4647_v38 = vcombine.low %v1715_v30, %v1723_v63  ;;  %v5294_v2 = vld [vmem:[%s5813_s10 + $0x98] sm:$0xff]  }
 0x917   : > { %v1685_v5 = vmul.f32 %v4621_v1, %v1677_v3  ;;  %v5292_v1 = vld [vmem:[%s5813_s10 + $0xd8] sm:$0xff]   ;;  %v5295_v3 = vld [vmem:[%s5813_s10 + $0x60] sm:$0xff]  }
 0x919   : > { %v1693_v11 = vadd.f32 %v4622_v4, %v1685_v5  ;;  %v5296_v4 = vld [vmem:[%s5813_s10 + $0xe0] sm:$0xff]  }
 0x91a   : > { %v5297_v5 = vld [vmem:[%s5813_s10 + $0x20] sm:$0xff]  }
 0x91b   : > { %v6123_v12 = vpack.c.bf16 %v1693_v11, %v1692_v10  ;;  %v5302_v10 = vld [vmem:[%s5813_s10 + $0xa8] sm:$0xff]   ;;  %v5303_v11 = vld [vmem:[%s5813_s10 + $0x70] sm:$0xff]  }
 0x91d   : > { %4655 = vmatmul.mubr.msk.bf16.vlgmr.msra.gmra.mrb[8].mxu0 %vm1079_vm2, %v6123_v12  ;;  %4656 = vmatmul.mubr.msk.bf16.vlgmr.msra.gmra.mrb[8].mxu1 %vm1079_vm2, %v6123_v12 }
 0x91e   : > { %2061 = vmatpush1.bf16.msra.mxu0 %v4627_v41  ;;  %2104 = vmatpush1.bf16.msra.mxu1 %v4629_v53  ;;  %v5280_v41 = vld [vmem:[%s5813_s10 + $0xc0] sm:$0xff]  }
 0x91f   : > { %2062 = vmatprep.subr.bf16.mxu0 %v4644_v14  ;;  %2105 = vmatprep.subr.bf16.mxu1 %v4646_v20  ;;  %v5281_v53 = vld [vmem:[%s5813_s10] sm:$0xff]   ;;  %v5305_v14 = vld [vmem:[%s5813_s10 + $0x30] sm:$0xff]  }
 0x920   : > { %2092 = vmatprep.mubr.bf16.mxu0 %v5604_v51  ;;  %2135 = vmatprep.mubr.bf16.mxu1 %v5604_v51  ;;  %v5306_v20 = vld [vmem:[%s5813_s10 + $0xb0] sm:$0xff]  }
 0x922   : > { %2063 = vmatpush1.bf16.msra.mxu0 %v4643_v27  ;;  %2106 = vmatpush1.bf16.msra.mxu1 %v4645_v62  ;;  %v5311_v27 = vld [vmem:[%s5813_s10 + $0x140] sm:$0xff]  }
 0x923   : > { %2146 = vmatprep.subr.bf16.mxu0 %v4632_v28  ;;  %2189 = vmatprep.subr.bf16.mxu1 %v4634_v29  ;;  %v5312_v62 = vld [vmem:[%s5813_s10 + $0x1c0] sm:$0xff]   ;;  %v1731_v28 = vlaneseq }
 0x925   : > { %4657 = vmatmul.mubr.msk.bf16.vlgmr.msra.gmra.mrb[12].mxu0 %vm1079_vm2, %v6123_v12  ;;  %4658 = vmatmul.mubr.msk.bf16.vlgmr.msra.gmra.mrb[12].mxu1 %vm1079_vm2, %v6123_v12  ;;  %v6197_v29 = vshrl.u32 %v1731_v28, 7 }
 0x926   : > { %2147 = vmatpush1.bf16.msra.mxu0 %v4631_v33  ;;  %2190 = vmatpush1.bf16.msra.mxu1 %v4633_v15 }
 0x927   : > { %2148 = vmatprep.subr.bf16.mxu0 %v4648_v34  ;;  %2191 = vmatprep.subr.bf16.mxu1 %v4650_v35  ;;  %v6200_v30 = vsub.s32 0, %v6197_v29  ;;  %v1741_v63 = vsub.s32 2, %v6197_v29  ;;  %v6205_v32 = vsub.s32 1, %v6197_v29  ;;  %v1745_v33 = vsub.s32 3, %v6197_v29 }
 0x928   : > { %2178 = vmatprep.mubr.bf16.mxu0 %v5604_v51  ;;  %2221 = vmatprep.mubr.bf16.mxu1 %v5604_v51  ;;  %v1749_v37 = vsub.s32 4, %v6197_v29  ;;  %v1757_v43 = vsub.s32 6, %v6197_v29 }
 0x929   : > { %v1734_v15 = vrot.slane %v1727_v31, %v6200_v30  ;;  %v1742_v34 = vrot.slane %v1727_v31, %v1741_v63  ;;  %v1738_v35 = vrot.slane %v1727_v31, %v6205_v32  ;;  %v1746_v19 = vrot.slane %v1727_v31, %v1745_v33 }
 0x92a   : > { %2149 = vmatpush1.bf16.msra.mxu0 %v4647_v38  ;;  %2192 = vmatpush1.bf16.msra.mxu1 %v4649_v39 }
 0x92b   : > { %2232 = vmatprep.subr.bf16.mxu0 %v4636_v40  ;;  %2275 = vmatprep.subr.bf16.mxu1 %v4638_v42 }
 0x92d   : > { %4659 = vmatmul.mubr.msk.bf16.vlgmr.msra.gmra.mrb[16].mxu0 %vm1079_vm2, %v6123_v12  ;;  %4660 = vmatmul.mubr.msk.bf16.vlgmr.msra.gmra.mrb[16].mxu1 %vm1079_vm2, %v6123_v12 }
 0x92e   : > { %2233 = vmatpush1.bf16.msra.mxu0 %v4635_v46  ;;  %2276 = vmatpush1.bf16.msra.mxu1 %v4637_v18  ;;  %v1753_v18 = vsub.s32 5, %v6197_v29 }
 0x92f   : > { %2234 = vmatprep.subr.bf16.mxu0 %v4652_v47  ;;  %2277 = vmatprep.subr.bf16.mxu1 %v4654_v48  ;;  %v1761_v47 = vsub.s32 7, %v6197_v29 }
 0x930   : > { %2264 = vmatprep.mubr.bf16.mxu0 %v5604_v51  ;;  %2307 = vmatprep.mubr.bf16.mxu1 %v5604_v51  ;;  %v5285_v51 = vld [vmem:[%s5813_s10 + $0x8] sm:$0xff]  }
 0x932   : > { %2235 = vmatpush1.bf16.msra.mxu0 %v4651_v49  ;;  %2278 = vmatpush1.bf16.msra.mxu1 %v4653_v52 }
 0x933   : > { %4923 = vmatprep.subr.bf16.mxu0 %v5279_v50  ;;  %4945 = vmatprep.subr.bf16.mxu1 %v5280_v41  ;;  %v1750_v41 = vrot.slane %v1727_v31, %v1749_v37 }
 0x935   : > { %4661 = vmatmul.mubr.msk.bf16.vlgmr.msra.gmra.mrb[20].mxu0 %vm1079_vm2, %v6123_v12  ;;  %4662 = vmatmul.mubr.msk.bf16.vlgmr.msra.gmra.mrb[20].mxu1 %vm1079_vm2, %v6123_v12  ;;  %v5304_v12 = vld [vmem:[%s5813_s10 + $0xf0] sm:$0xff]  }
 0x936   : > { %4924 = vmatpush3.bf16.msra.mxu0 %v5281_v53  ;;  %4946 = vmatpush3.bf16.msra.mxu1 %v5282_v54  ;;  %v1728_v53 = vld [vmem:[%s5803_s24 + $0x8] sm:$0xff]  ;;  %s6858_s24 = scalar_lea.vmem %s6800_s17, %s5757_s7  ;;  %s6861_s7 = sld [smem:[#allocation18_spill]] (!%p4792_p5) }
 0x937   : > { %4925 = vmatprep.subr.bf16.mxu0 %v5283_v55  ;;  %4947 = vmatprep.subr.bf16.mxu1 %v5284_v56 }
 0x93a   : > { %4926 = vmatpush3.bf16.msra.mxu0 %v5285_v51  ;;  %4948 = vmatpush3.bf16.msra.mxu1 %v5286_v57  ;;  %v1758_v57 = vrot.slane %v1727_v31, %v1757_v43 }
 0x93b   : > { %4927 = vmatprep.subr.bf16.mxu0 %v5287_v58  ;;  %4949 = vmatprep.subr.bf16.mxu1 %v5288_v59  ;;  %v1754_v59 = vrot.slane %v1727_v31, %v1753_v18 }
 0x93e   : > { %4928 = vmatpush3.bf16.msra.mxu0 %v5289_v60  ;;  %4950 = vmatpush3.bf16.msra.mxu1 %v5290_v61  ;;  %v1762_v60 = vrot.slane %v1727_v31, %v1761_v47  ;;  %v6233_v31 = vrot.slane %v1728_v53, %v1761_v47 }
 0x93f   : > { %4929 = vmatprep.subr.bf16.mxu0 %v5291_v0  ;;  %4951 = vmatprep.subr.bf16.mxu1 %v5292_v1  ;;  %v6216_v1 = vrot.slane %v1728_v53, %v6200_v30 }
 0x942   : > { %4930 = vmatpush3.bf16.msra.mxu0 %v5293_v13  ;;  %4952 = vmatpush3.bf16.msra.mxu1 %v5294_v2 }
 0x943   : > { %4931 = vmatprep.subr.bf16.mxu0 %v5295_v3  ;;  %4953 = vmatprep.subr.bf16.mxu1 %v5296_v4  ;;  %v6218_v4 = vrot.slane %v1728_v53, %v1741_v63  ;;  %v6231_v63 = vrot.slane %v1728_v53, %v1753_v18 }
 0x946   : > { %4932 = vmatpush3.bf16.msra.mxu0 %v5297_v5  ;;  %4954 = vmatpush3.bf16.msra.mxu1 %v5298_v6 }
 0x947   : > { %4933 = vmatprep.subr.bf16.mxu0 %v5299_v7  ;;  %4955 = vmatprep.subr.bf16.mxu1 %v5300_v8  ;;  %v6221_v8 = vrot.slane %v1728_v53, %v6205_v32 }
 0x94a   : > { %4934 = vmatpush3.bf16.msra.mxu0 %v5301_v9  ;;  %4956 = vmatpush3.bf16.msra.mxu1 %v5302_v10  ;;  %v6223_v9 = vrot.slane %v1728_v53, %v1745_v33 }
 0x94b   : > { %4935 = vmatprep.subr.bf16.mxu0 %v5303_v11  ;;  %4957 = vmatprep.subr.bf16.mxu1 %v5304_v12 }
 0x94e   : > { %4936 = vmatpush3.bf16.msra.mxu0 %v5305_v14  ;;  %4958 = vmatpush3.bf16.msra.mxu1 %v5306_v20  ;;  %v6225_v20 = vrot.slane %v1728_v53, %v1749_v37 }
 0x94f   : > { %4937 = vmatprep.subr.bf16.mxu0 %v5307_v22  ;;  %4959 = vmatprep.subr.bf16.mxu1 %v5308_v23 }
 0x952   : > { %4938 = vmatpush3.bf16.msra.mxu0 %v5309_v25  ;;  %4960 = vmatpush3.bf16.msra.mxu1 %v5310_v26 }
 0x953   : > { %4967 = vmatprep.subr.bf16.mxu0 %v5311_v27  ;;  %4989 = vmatprep.subr.bf16.mxu1 %v5312_v62  ;;  %v6229_v62 = vrot.slane %v1728_v53, %v1757_v43 }
 0x9f0   : > { %v2008_v16 = vpop.f32.mrb[8].mxu0  ;;  %v2051_v36 = vpop.f32.mrb[8].mxu1 }
 0x9f1   : > { %v2009_v38 = vadd.f32 %v2008_v16, %v1734_v15  ;;  %v2052_v39 = vadd.f32 %v2051_v36, %v1742_v34  ;;  %v2010_v40 = vpop.f32.mrb[9].mxu0  ;;  %v2053_v42 = vpop.f32.mrb[9].mxu1 }
 0x9f2   : > { %v2011_v17 = vadd.f32 %v2010_v40, %v1738_v35  ;;  %v2054_v44 = vadd.f32 %v2053_v42, %v1746_v19  ;;  %v2012_v45 = vpop.f32.mrb[10].mxu0  ;;  %v2055_v46 = vpop.f32.mrb[10].mxu1 }
 0x9f3   : > { %v2350_v48 = vmul.f32 0.70710677, %v2009_v38  ;;  %v2352_v49 = vmul.f32 0.70710677, %v2052_v39  ;;  %v2013_v54 = vadd.f32 %v2012_v45, %v1734_v15  ;;  %v2056_v55 = vadd.f32 %v2055_v46, %v1742_v34  ;;  %v2014_v56 = vpop.f32.mrb[11].mxu0  ;;  %v2057_v51 = vpop.f32.mrb[11].mxu1 }
 0x9f4   : > { %v2351_v52 = vmul.f32 0.70710677, %v2011_v17  ;;  %v2353_v50 = vmul.f32 0.70710677, %v2054_v44  ;;  %v2015_v58 = vadd.f32 %v2014_v56, %v1738_v35  ;;  %v2058_v0 = vadd.f32 %v2057_v51, %v1746_v19 }
 0x9f5   : > { %5423 = verf.f32 %v2350_v48  ;;  %v2366_v61 = vmul.f32 0.70710677, %v2013_v54  ;;  %v2368_v13 = vmul.f32 0.70710677, %v2056_v55  ;;  %v2318_v33 = vmul.f32 0.5, %v2009_v38 }
 0x9f6   : > { %5425 = verf.f32 %v2352_v49  ;;  %v2367_v2 = vmul.f32 0.70710677, %v2015_v58  ;;  %v2369_v22 = vmul.f32 0.70710677, %v2058_v0  ;;  %v2320_v15 = vmul.f32 0.5, %v2052_v39 }
 0x9f7   : > { %5427 = verf.f32 %v2351_v52  ;;  %v6235_v37 = vmul.f32 0.5, %v2011_v17  ;;  %v6237_v40 = vmul.f32 0.5, %v2054_v44  ;;  %v2334_v46 = vmul.f32 0.5, %v2013_v54 }
 0x9f8   : > { %5429 = verf.f32 %v2353_v50  ;;  %v2094_v3 = vpop.f32.mrb[12].mxu0  ;;  %v2137_v6 = vpop.f32.mrb[12].mxu1  ;;  %v2336_v49 = vmul.f32 0.5, %v2056_v55  ;;  %v6240_v52 = vmul.f32 0.5, %v2015_v58  ;;  %v6242_v53 = vmul.f32 0.5, %v2058_v0 }
 0x9f9   : > { %5431 = verf.f32 %v2366_v61  ;;  %v2095_v5 = vadd.f32 %v2094_v3, %v1750_v41  ;;  %v2096_v7 = vpop.f32.mrb[13].mxu0  ;;  %v2138_v10 = vadd.f32 %v2137_v6, %v1758_v57  ;;  %v2139_v12 = vpop.f32.mrb[13].mxu1 }
 0x9fa   : > { %5433 = verf.f32 %v2368_v13  ;;  %v2097_v11 = vadd.f32 %v2096_v7, %v1754_v59  ;;  %v2098_v14 = vpop.f32.mrb[14].mxu0  ;;  %v6227_v25 = vadd.f32 %v2139_v12, %v1762_v60  ;;  %v2141_v26 = vpop.f32.mrb[14].mxu1 }
 0x9fb   : > { %v2354_v23 = vmul.f32 0.70710677, %v2095_v5  ;;  %v2100_v27 = vpop.f32.mrb[15].mxu0  ;;  %5435 = verf.f32 %v2367_v2  ;;  %v2356_v28 = vmul.f32 0.70710677, %v2138_v10  ;;  %v2143_v29 = vpop.f32.mrb[15].mxu1  ;;  %v2099_v35 = vadd.f32 %v2098_v14, %v1750_v41 }
 0x9fc   : > { %v2355_v34 = vmul.f32 0.70710677, %v2097_v11  ;;  %v2142_v19 = vadd.f32 %v2141_v26, %v1758_v57  ;;  %v2101_v16 = vadd.f32 %v2100_v27, %v1754_v59  ;;  %v2357_v42 = vmul.f32 0.70710677, %v6227_v25 }
 0x9fd   : > { %5437 = verf.f32 %v2354_v23  ;;  %v2370_v18 = vmul.f32 0.70710677, %v2099_v35  ;;  %v2144_v38 = vadd.f32 %v2143_v29, %v1762_v60  ;;  %v6244_v59 = vmul.f32 0.5, %v2095_v5 }
 0x9fe   : > { %5439 = verf.f32 %v2356_v28  ;;  %v2372_v50 = vmul.f32 0.70710677, %v2142_v19  ;;  %v2371_v56 = vmul.f32 0.70710677, %v2101_v16  ;;  %v6246_v60 = vmul.f32 0.5, %v2138_v10 }
 0x9ff   : > { %v5424_v36 = vpop.eup %5423  ;;  %5441 = verf.f32 %v2369_v22  ;;  %v6248_v61 = vmul.f32 0.5, %v2097_v11  ;;  %v2373_v3 = vmul.f32 0.70710677, %v2144_v38 }
 0xa00   : > { %v5426_v43 = vpop.eup %5425  ;;  %v2414_v45 = vadd.f32 1.0, %v5424_v36  ;;  %v2180_v39 = vpop.f32.mrb[16].mxu0  ;;  %5443 = verf.f32 %v2355_v34  ;;  %v6268_v36 = vmul.f32 0.5, %v6227_v25 }
 0xa01   : > { %v2223_v47 = vpop.f32.mrb[16].mxu1  ;;  %v5428_v48 = vpop.eup %5427  ;;  %v2416_v44 = vadd.f32 1.0, %v5426_v43  ;;  %5445 = verf.f32 %v2370_v18  ;;  %v2181_v5 = vadd.f32 %v2180_v39, %v6216_v1 }
 0xa02   : > { %v2182_v17 = vpop.f32.mrb[17].mxu0  ;;  %v5430_v41 = vpop.eup %5429  ;;  %5447 = verf.f32 %v2372_v50  ;;  %v6252_v2 = vmul.f32 %v2414_v45, %v2318_v33  ;;  %v2415_v7 = vadd.f32 1.0, %v5428_v48  ;;  %v2224_v10 = vadd.f32 %v2223_v47, %v6218_v4 }
 0xa03   : > { %v2225_v51 = vpop.f32.mrb[17].mxu1  ;;  %v2184_v57 = vpop.f32.mrb[18].mxu0  ;;  %5449 = verf.f32 %v2357_v42  ;;  %v6258_v14 = vmul.f32 %v2416_v44, %v2320_v15  ;;  %v2417_v22 = vadd.f32 1.0, %v5430_v41  ;;  %v2358_v28 = vmul.f32 0.70710677, %v2181_v5 }
 0xa04   : > { %v5432_v54 = vpop.eup %5431  ;;  %v2227_v55 = vpop.f32.mrb[18].mxu1  ;;  %5451 = verf.f32 %v2371_v56  ;;  %v2183_v29 = vadd.f32 %v2182_v17, %v6221_v8  ;;  %v2338_v15 = vmul.f32 0.5, %v2099_v35  ;;  %v2340_v42 = vmul.f32 0.5, %v2142_v19 }
 0xa05   : > { %v6250_v58 = vpop.f32.mrb[19].mxu0  ;;  %v5434_v13 = vpop.eup %5433  ;;  %v2430_v0 = vadd.f32 1.0, %v5432_v54  ;;  %5453 = verf.f32 %v2373_v3  ;;  %v6272_v47 = vmul.f32 0.5, %v2101_v16  ;;  %v6274_v48 = vmul.f32 0.5, %v2144_v38 }
 0xa06   : > { %v6254_v6 = vpop.f32.mrb[19].mxu1  ;;  %v2432_v12 = vadd.f32 1.0, %v5434_v13  ;;  %v5436_v11 = vpop.eup %5435  ;;  %v6277_v17 = vmul.f32 %v2415_v7, %v6235_v37  ;;  %5455 = verf.f32 %v2358_v28  ;;  %v2360_v35 = vmul.f32 0.70710677, %v2224_v10 }
 0xa07   : > { %v6260_v23 = vmul.f32 %v2430_v0, %v2334_v46  ;;  %v5438_v26 = vpop.eup %5437  ;;  %v2431_v39 = vadd.f32 1.0, %v5436_v11  ;;  %v6284_v56 = vmul.f32 %v2417_v22, %v6237_v40  ;;  %v2359_v54 = vmul.f32 0.70710677, %v2183_v29 }
 0xa08   : > { %v6262_v27 = vmul.f32 %v2432_v12, %v2336_v49  ;;  %v5440_v33 = vpop.eup %5439  ;;  %v2266_v43 = vpop.f32.mrb[20].mxu0  ;;  %v2418_v25 = vadd.f32 1.0, %v5438_v26  ;;  %v2226_v38 = vadd.f32 %v2225_v51, %v6223_v9  ;;  %5457 = verf.f32 %v2360_v35 }
 0xa09   : > { %v2478_v34 = vpack.c.bf16 %v6260_v23, %v6252_v2  ;;  %v2309_v45 = vpop.f32.mrb[20].mxu1  ;;  %v5442_v46 = vpop.eup %5441  ;;  %v2420_v16 = vadd.f32 1.0, %v5440_v33  ;;  %v2185_v7 = vadd.f32 %v2184_v57, %v6216_v1  ;;  %v2228_v12 = vadd.f32 %v2227_v55, %v6218_v4  ;;  %v5317_v2 = vld [vmem:[%s5813_s10 + $0x108] sm:$0xff]  }
 0xa0a   : > { %v2268_v49 = vpop.f32.mrb[21].mxu0  ;;  %v2311_v50 = vpop.f32.mrb[21].mxu1  ;;  %v2433_v3 = vadd.f32 1.0, %v5442_v46  ;;  %v6294_v26 = vmul.f32 %v2431_v39, %v6240_v52  ;;  %v6296_v22 = vmul.f32 0.5, %v2181_v5  ;;  %v6298_v28 = vmul.f32 0.5, %v2224_v10 }
 0xa0b   : > { %v6279_v19 = vpop.f32.mrb[22].mxu0  ;;  %v6281_v41 = vpop.f32.mrb[22].mxu1  ;;  %v6301_v33 = vmul.f32 %v2418_v25, %v6244_v59  ;;  %v2361_v46 = vmul.f32 0.70710677, %v2226_v38  ;;  %v2374_v35 = vmul.f32 0.70710677, %v2185_v7  ;;  %v6304_v1 = vmul.f32 %v2420_v16, %v6246_v60 }
 0xa0c   : > { %v5444_v44 = vpop.eup %5443  ;;  %v6287_v13 = vpop.f32.mrb[23].mxu0  ;;  %5459 = verf.f32 %v2359_v54  ;;  %v2376_v52 = vmul.f32 0.70710677, %v2228_v12  ;;  %v2187_v5 = vadd.f32 %v6250_v58, %v6221_v8  ;;  %v2230_v59 = vadd.f32 %v6254_v6, %v6223_v9 }
 0xa0d   : > { %v6289_v0 = vpop.f32.mrb[23].mxu1  ;;  %v5446_v37 = vpop.eup %5445  ;;  %5461 = verf.f32 %v2361_v46  ;;  %v2465_v39 = vmul.f32 %v2433_v3, %v6242_v53  ;;  %v2419_v25 = vadd.f32 1.0, %v5444_v44  ;;  %v6319_v54 = vmul.f32 0.5, %v2183_v29 }
 0xa0e   : > { %v5448_v11 = vpop.eup %5447  ;;  %v2434_v40 = vadd.f32 1.0, %v5446_v37  ;;  %5463 = verf.f32 %v2374_v35  ;;  %v2377_v8 = vmul.f32 0.70710677, %v2230_v59  ;;  %v6322_v9 = vadd.f32 %v2266_v43, %v6225_v20 }
 0xa0f   : > { %v5450_v51 = vpop.eup %5449  ;;  %v2436_v18 = vadd.f32 1.0, %v5448_v11  ;;  %5465 = verf.f32 %v2376_v52  ;;  %v6325_v6 = vadd.f32 %v2309_v45, %v6229_v62  ;;  %v6328_v44 = vadd.f32 %v2268_v49, %v6231_v63 }
 0xa10   : > { %v6306_v4 = vmul.f32 %v2434_v40, %v2338_v15  ;;  %v5452_v57 = vpop.eup %5451  ;;  %v2421_v15 = vadd.f32 1.0, %v5450_v51  ;;  %v6331_v37 = vmul.f32 %v2419_v25, %v6248_v61  ;;  %v2362_v29 = vmul.f32 0.70710677, %v6322_v9  ;;  %v5314_v25 = vld [vmem:[%s5813_s10 + $0x180] sm:$0xff]  }
 0xa11   : > { %v6308_v55 = vmul.f32 %v2436_v18, %v2340_v42  ;;  %v5454_v10 = vpop.eup %5453  ;;  %v2375_v18 = vmul.f32 0.70710677, %v2187_v5  ;;  %v2435_v16 = vadd.f32 1.0, %v5452_v57  ;;  %v6335_v3 = vadd.f32 %v2311_v50, %v6233_v31 }
 0xa12   : > { %v2482_v60 = vpack.c.bf16 %v6306_v4, %v6301_v33  ;;  %v5456_v58 = vpop.eup %5455  ;;  %v2437_v53 = vadd.f32 1.0, %v5454_v10  ;;  %v6338_v11 = vmul.f32 %v2421_v15, %v6268_v36  ;;  %v6340_v40 = vmul.f32 0.5, %v2226_v38  ;;  %v5352_v33 = vld [vmem:[%s5813_s10 + $0x2d0] sm:$0xff]  }
 0xa13   : > { %v2484_v42 = vpack.c.bf16 %v6308_v55, %v6304_v1  ;;  %5467 = verf.f32 %v2375_v18  ;;  %v5458_v43 = vpop.eup %5457  ;;  %v2342_v45 = vmul.f32 0.5, %v2185_v7  ;;  %v2364_v49 = vmul.f32 0.70710677, %v6325_v6  ;;  %v5313_v7 = vld [vmem:[%s5813_s10 + $0x100] sm:$0xff]   ;;  %v5353_v1 = vld [vmem:[%s5813_s10 + $0x210] sm:$0xff]   ;;  %v5355_v55 = vld [vmem:[%s5813_s10 + $0x258] sm:$0xff]  }
 0xa14   : > { %5469 = verf.f32 %v2377_v8  ;;  %v6344_v61 = vmul.f32 %v2435_v16, %v6272_v47  ;;  %v2422_v51 = vadd.f32 1.0, %v5456_v58  ;;  %v2344_v46 = vmul.f32 0.5, %v2228_v12  ;;  %v5354_v4 = vld [vmem:[%s5813_s10 + $0x290] sm:$0xff]  }
 0xa15   : > { %v2363_v35 = vmul.f32 0.70710677, %v6328_v44  ;;  %v6348_v50 = vmul.f32 %v2437_v53, %v6274_v48  ;;  %v2343_v52 = vmul.f32 0.5, %v2187_v5  ;;  %v2365_v36 = vmul.f32 0.70710677, %v6335_v3  ;;  %v5315_v48 = vld [vmem:[%s5813_s10 + $0x148] sm:$0xff]  }
 0xa16   : > { %v2479_v38 = vpack.c.bf16 %v6294_v26, %v6277_v17  ;;  %v5460_v57 = vpop.eup %5459  ;;  %v2424_v10 = vadd.f32 1.0, %v5458_v43  ;;  %5471 = verf.f32 %v2362_v29  ;;  %v2481_v47 = vpack.c.bf16 %v2465_v39, %v6284_v56  ;;  %v5316_v56 = vld [vmem:[%s5813_s10 + $0x1c8] sm:$0xff]   ;;  %v5319_v39 = vld [vmem:[%s5813_s10 + $0x150] sm:$0xff]  }
 0xa17   : > { %v6357_v12 = vadd.f32 %v6279_v19, %v6225_v20  ;;  %v5462_v15 = vpop.eup %5461  ;;  %v2345_v5 = vmul.f32 0.5, %v2230_v59  ;;  %5473 = verf.f32 %v2364_v49  ;;  %v6363_v18 = vadd.f32 %v6281_v41, %v6229_v62 }
 0xa18   : > { %3557 = vmatprep.mubr.bf16.mxu0 %v2479_v38  ;;  %v6367_v17 = vadd.f32 %v6287_v13, %v6231_v63  ;;  %v5464_v26 = vpop.eup %5463  ;;  %v6371_v20 = vmul.f32 %v2422_v51, %v6296_v22  ;;  %5475 = verf.f32 %v2363_v35  ;;  %3598 = vmatprep.mubr.bf16.mxu1 %v2481_v47  ;;  %v6379_v62 = vadd.f32 %v6289_v0, %v6233_v31  ;;  %v5318_v0 = vld [vmem:[%s5813_s10 + $0x188] sm:$0xff]   ;;  %v5321_v35 = vld [vmem:[%s5813_s10 + $0x110] sm:$0xff]  }
 0xa19   : > { %v2378_v19 = vmul.f32 0.70710677, %v6357_v12  ;;  %3558 = vmatmul.mubr.bf16.vlgmr.msra.gmra.mrb[24].mxu0 %v2478_v34  ;;  %v5466_v63 = vpop.eup %5465  ;;  %v2423_v41 = vadd.f32 1.0, %v5460_v57  ;;  %v2438_v13 = vadd.f32 1.0, %v5464_v26  ;;  %5477 = verf.f32 %v2365_v36 }
 0xa1a   : > { %v2380_v22 = vmul.f32 0.70710677, %v6363_v18  ;;  %v6857_v59 = vpack.c.bf16 %v6262_v27, %v6258_v14  ;;  %4968 = vmatpush3.bf16.msra.mxu0 %v5313_v7  ;;  %v6387_v23 = vmul.f32 %v2424_v10, %v6298_v28  ;;  %v2440_v34 = vadd.f32 1.0, %v5466_v63  ;;  %v5320_v27 = vld [vmem:[%s5813_s10 + $0x1d0] sm:$0xff]   ;;  %v5325_v10 = vld [vmem:[%s5813_s10 + $0x118] sm:$0xff]  }
 0xa1b   : > { %5479 = verf.f32 %v2378_v19  ;;  %v2379_v31 = vmul.f32 0.70710677, %v6367_v17  ;;  %4969 = vmatprep.subr.bf16.mxu0 %v5315_v48  ;;  %v2425_v8 = vadd.f32 1.0, %v5462_v15  ;;  %v6392_v58 = vmul.f32 %v2438_v13, %v2342_v45  ;;  %v5327_v48 = vld [vmem:[%s5813_s10 + $0x160] sm:$0xff]  }
 0xa1c   : > { %3599 = vmatmul.mubr.bf16.vlgmr.msra.gmra.mrb[24].mxu1 %v6857_v59  ;;  %5481 = verf.f32 %v2380_v22  ;;  %v2381_v14 = vmul.f32 0.70710677, %v6379_v62  ;;  %v6396_v53 = vmul.f32 %v2440_v34, %v2344_v46  ;;  %v2483_v43 = vpack.c.bf16 %v6344_v61, %v6331_v37  ;;  %v5322_v37 = vld [vmem:[%s5813_s10 + $0x190] sm:$0xff]   ;;  %v5323_v61 = vld [vmem:[%s5813_s10 + $0x158] sm:$0xff]  }
 0xa1d   : > { %4990 = vmatpush3.bf16.msra.mxu1 %v5314_v25  ;;  %v5468_v16 = vpop.eup %5467  ;;  %5483 = verf.f32 %v2379_v31  ;;  %v2486_v49 = vpack.c.bf16 %v6392_v58, %v6371_v20  ;;  %v2485_v51 = vpack.c.bf16 %v6348_v50, %v6338_v11  ;;  %v6406_v46 = vmul.f32 %v2423_v41, %v6319_v54  ;;  %v5324_v54 = vld [vmem:[%s5813_s10 + $0x1d8] sm:$0xff]   ;;  %v5329_v31 = vld [vmem:[%s5813_s10 + $0x120] sm:$0xff]   ;;  %v5384_v20 = vld [vmem:[%s5813_s10 + $0x3d0] sm:$0xff]  }
 0xa1e   : > { %4991 = vmatprep.subr.bf16.mxu1 %v5316_v56  ;;  %v5470_v28 = vpop.eup %5469  ;;  %v2439_v29 = vadd.f32 1.0, %v5468_v16  ;;  %5485 = verf.f32 %v2381_v14  ;;  %4970 = vmatpush3.bf16.msra.mxu0 %v5317_v2  ;;  %v2488_v36 = vpack.c.bf16 %v6396_v53, %v6387_v23  ;;  %v6415_v7 = vmul.f32 %v2425_v8, %v6340_v40  ;;  %v5326_v25 = vld [vmem:[%s5813_s10 + $0x198] sm:$0xff]   ;;  %v5328_v56 = vld [vmem:[%s5813_s10 + $0x1e0] sm:$0xff]   ;;  %v5331_v14 = vld [vmem:[%s5813_s10 + $0x168] sm:$0xff]  }
 0xa1f   : > { %v2441_v45 = vadd.f32 1.0, %v5470_v28  ;;  %4971 = vmatprep.subr.bf16.mxu0 %v5319_v39  ;;  %3639 = vmatprep.mubr.bf16.mxu0 %v2483_v43  ;;  %v2330_v19 = vmul.f32 0.5, %v6322_v9  ;;  %v2332_v63 = vmul.f32 0.5, %v6325_v6  ;;  %v2331_v22 = vmul.f32 0.5, %v6328_v44  ;;  %v5330_v8 = vld [vmem:[%s5813_s10 + $0x1a0] sm:$0xff]   ;;  %v5385_v23 = vld [vmem:[%s5813_s10 + $0x310] sm:$0xff]  }
 0xa20   : > { %v6410_v38 = vmul.f32 %v2439_v29, %v2343_v52  ;;  %v5472_v50 = vpop.eup %5471  ;;  %3680 = vmatprep.mubr.bf16.mxu1 %v2485_v51  ;;  %v2346_v2 = vmul.f32 0.5, %v6357_v12  ;;  %v2333_v39 = vmul.f32 0.5, %v6335_v3  ;;  %v2348_v9 = vmul.f32 0.5, %v6363_v18  ;;  %v5332_v3 = vld [vmem:[%s5813_s10 + $0x1e8] sm:$0xff]   ;;  %v5386_v58 = vld [vmem:[%s5813_s10 + $0x390] sm:$0xff]   ;;  %v5387_v53 = vld [vmem:[%s5813_s10 + $0x358] sm:$0xff]  }
 0xa21   : > { %4992 = vmatpush3.bf16.msra.mxu1 %v5318_v0  ;;  %v6417_v11 = vmul.f32 %v2441_v45, %v2345_v5  ;;  %v5474_v57 = vpop.eup %5473  ;;  %v2426_v5 = vadd.f32 1.0, %v5472_v50  ;;  %v2347_v28 = vmul.f32 0.5, %v6367_v17  ;;  %v2349_v45 = vmul.f32 0.5, %v6379_v62  ;;  %v5334_v62 = vld [vmem:[%s5813_s10 + $0x1a8] sm:$0xff]  }
 0xa22   : > { %4993 = vmatprep.subr.bf16.mxu1 %v5320_v27  ;;  %v2487_v52 = vpack.c.bf16 %v6410_v38, %v6406_v46  ;;  %4972 = vmatpush3.bf16.msra.mxu0 %v5321_v35  ;;  %v5476_v40 = vpop.eup %5475  ;;  %v2428_v41 = vadd.f32 1.0, %v5474_v57  ;;  %v5358_v46 = vld [vmem:[%s5813_s10 + $0x298] sm:$0xff]   ;;  %v5359_v38 = vld [vmem:[%s5813_s10 + $0x260] sm:$0xff]  }
 0xa23   : > { %v2489_v47 = vpack.c.bf16 %v6417_v11, %v6415_v7  ;;  %4973 = vmatprep.subr.bf16.mxu0 %v5323_v61  ;;  %v5478_v15 = vpop.eup %5477  ;;  %v2427_v59 = vadd.f32 1.0, %v5476_v40  ;;  %v6437_v27 = vmul.f32 %v2426_v5, %v2330_v19  ;;  %v5333_v61 = vld [vmem:[%s5813_s10 + $0x128] sm:$0xff]   ;;  %v5336_v40 = vld [vmem:[%s5813_s10 + $0x1f0] sm:$0xff]   ;;  %v5341_v19 = vld [vmem:[%s5813_s10 + $0x138] sm:$0xff]  }
 0xa24   : > { %v2429_v16 = vadd.f32 1.0, %v5478_v15  ;;  %v6443_v43 = vmul.f32 %v2428_v41, %v2332_v63  ;;  %v5337_v15 = vld [vmem:[%s5813_s10 + $0x130] sm:$0xff]   ;;  %v5342_v63 = vld [vmem:[%s5813_s10 + $0x1b8] sm:$0xff]   ;;  %v5343_v41 = vld [vmem:[%s5813_s10 + $0x240] sm:$0xff]  }
 0xa25   : > { %4994 = vmatpush3.bf16.msra.mxu1 %v5322_v37  ;;  %v5480_v26 = vpop.eup %5479  ;;  %v6448_v35 = vmul.f32 %v2427_v59, %v2331_v22  ;;  %v5338_v5 = vld [vmem:[%s5813_s10 + $0x1b0] sm:$0xff]   ;;  %v5345_v22 = vld [vmem:[%s5813_s10 + $0x200] sm:$0xff]  }
 0xa26   : > { %4995 = vmatprep.subr.bf16.mxu1 %v5324_v54  ;;  %v5482_v13 = vpop.eup %5481  ;;  %v2442_v34 = vadd.f32 1.0, %v5480_v26  ;;  %4974 = vmatpush3.bf16.msra.mxu0 %v5325_v10  ;;  %v6455_v54 = vmul.f32 %v2429_v16, %v2333_v39  ;;  %v5335_v10 = vld [vmem:[%s5813_s10 + $0x170] sm:$0xff]   ;;  %v5340_v26 = vld [vmem:[%s5813_s10 + $0x1f8] sm:$0xff]   ;;  %v5346_v59 = vld [vmem:[%s5813_s10 + $0x280] sm:$0xff]  }
 0xa27   : > { %v5484_v0 = vpop.eup %5483  ;;  %v2444_v6 = vadd.f32 1.0, %v5482_v13  ;;  %4975 = vmatprep.subr.bf16.mxu0 %v5327_v48  ;;  %v5344_v13 = vld [vmem:[%s5813_s10 + $0x2c0] sm:$0xff]   ;;  %v5351_v39 = vld [vmem:[%s5813_s10 + $0x250] sm:$0xff]   ;;  %v5364_v16 = vld [vmem:[%s5813_s10 + $0x2e8] sm:$0xff]  }
 0xa28   : > { %v5486_v44 = vpop.eup %5485  ;;  %v6439_v12 = vmul.f32 %v2442_v34, %v2346_v2  ;;  %v2443_v29 = vadd.f32 1.0, %v5484_v0  ;;  %v5347_v2 = vld [vmem:[%s5813_s10 + $0x248] sm:$0xff]   ;;  %v5360_v7 = vld [vmem:[%s5813_s10 + $0x2e0] sm:$0xff]  }
 0xa29   : > { %4996 = vmatpush3.bf16.msra.mxu1 %v5326_v25  ;;  %v6445_v18 = vmul.f32 %v2444_v6, %v2348_v9  ;;  %v2445_v51 = vadd.f32 1.0, %v5486_v44  ;;  %v5348_v34 = vld [vmem:[%s5813_s10 + $0x2c8] sm:$0xff]   ;;  %v5361_v11 = vld [vmem:[%s5813_s10 + $0x220] sm:$0xff]   ;;  %v5369_v44 = vld [vmem:[%s5813_s10 + $0x230] sm:$0xff]  }
 0xa2a   : > { %4997 = vmatprep.subr.bf16.mxu1 %v5328_v56  ;;  %v2490_v37 = vpack.c.bf16 %v6439_v12, %v6437_v27  ;;  %v6452_v17 = vmul.f32 %v2443_v29, %v2347_v28  ;;  %4976 = vmatpush3.bf16.msra.mxu0 %v5329_v31  ;;  %v5339_v56 = vld [vmem:[%s5813_s10 + $0x178] sm:$0xff]   ;;  %v5349_v31 = vld [vmem:[%s5813_s10 + $0x208] sm:$0xff]   ;;  %v5370_v28 = vld [vmem:[%s5813_s10 + $0x2b0] sm:$0xff]  }
 0xa2b   : > { %v2492_v50 = vpack.c.bf16 %v6445_v18, %v6443_v43  ;;  %v6459_v57 = vmul.f32 %v2445_v51, %v2349_v45  ;;  %4977 = vmatprep.subr.bf16.mxu0 %v5331_v14  ;;  %v5350_v0 = vld [vmem:[%s5813_s10 + $0x288] sm:$0xff]   ;;  %v5368_v14 = vld [vmem:[%s5813_s10 + $0x2f0] sm:$0xff]   ;;  %v5371_v29 = vld [vmem:[%s5813_s10 + $0x278] sm:$0xff]  }
 0xa2c   : > { %v2491_v25 = vpack.c.bf16 %v6452_v17, %v6448_v35  ;;  %v5365_v9 = vld [vmem:[%s5813_s10 + $0x228] sm:$0xff]   ;;  %v5373_v45 = vld [vmem:[%s5813_s10 + $0x238] sm:$0xff]   ;;  %v5391_v17 = vld [vmem:[%s5813_s10 + $0x360] sm:$0xff]  }
 0xa2d   : > { %4998 = vmatpush3.bf16.msra.mxu1 %v5330_v8  ;;  %v2493_v48 = vpack.c.bf16 %v6459_v57, %v6455_v54  ;;  %v5366_v6 = vld [vmem:[%s5813_s10 + $0x2a8] sm:$0xff]   ;;  %v5367_v8 = vld [vmem:[%s5813_s10 + $0x270] sm:$0xff]   ;;  %v5374_v51 = vld [vmem:[%s5813_s10 + $0x2b8] sm:$0xff]  }
 0xa2e   : > { %4999 = vmatprep.subr.bf16.mxu1 %v5332_v3  ;;  %4978 = vmatpush3.bf16.msra.mxu0 %v5333_v61  ;;  %v5372_v3 = vld [vmem:[%s5813_s10 + $0x2f8] sm:$0xff]   ;;  %v5375_v61 = vld [vmem:[%s5813_s10 + $0x340] sm:$0xff]  }
 0xa2f   : > { %4979 = vmatprep.subr.bf16.mxu0 %v5335_v10  ;;  %v5377_v10 = vld [vmem:[%s5813_s10 + $0x300] sm:$0xff]   ;;  %v5390_v35 = vld [vmem:[%s5813_s10 + $0x398] sm:$0xff]  }
 0xa30   : > { %v5392_v54 = vld [vmem:[%s5813_s10 + $0x3e0] sm:$0xff]  }
 0xa31   : > { %5000 = vmatpush3.bf16.msra.mxu1 %v5334_v62  ;;  %v5376_v62 = vld [vmem:[%s5813_s10 + $0x3c0] sm:$0xff]  }
 0xa32   : > { %5001 = vmatprep.subr.bf16.mxu1 %v5336_v40  ;;  %4980 = vmatpush3.bf16.msra.mxu0 %v5337_v15  ;;  %v5378_v40 = vld [vmem:[%s5813_s10 + $0x380] sm:$0xff]   ;;  %v5379_v15 = vld [vmem:[%s5813_s10 + $0x348] sm:$0xff]  }
 0xa33   : > { %4981 = vmatprep.subr.bf16.mxu0 %v5339_v56  ;;  %v5381_v56 = vld [vmem:[%s5813_s10 + $0x308] sm:$0xff]   ;;  %v5393_v57 = vld [vmem:[%s5813_s10 + $0x320] sm:$0xff]  }
 0xa35   : > { %5002 = vmatpush3.bf16.msra.mxu1 %v5338_v5  ;;  %v5380_v5 = vld [vmem:[%s5813_s10 + $0x3c8] sm:$0xff]  }
 0xa36   : > { %5003 = vmatprep.subr.bf16.mxu1 %v5340_v26  ;;  %4982 = vmatpush3.bf16.msra.mxu0 %v5341_v19  ;;  %v5382_v26 = vld [vmem:[%s5813_s10 + $0x388] sm:$0xff]   ;;  %v5383_v19 = vld [vmem:[%s5813_s10 + $0x350] sm:$0xff]  }
 0xa37   : > { %5011 = vmatprep.subr.bf16.mxu0 %v5343_v41  ;;  %v5397_v41 = vld [vmem:[%s5813_s10 + $0x328] sm:$0xff]  }
 0xa39   : > { %5004 = vmatpush3.bf16.msra.mxu1 %v5342_v63  ;;  %3640 = vmatmul.mubr.bf16.vlgmr.msra.gmra.mrb[28].mxu0 %v2482_v60  ;;  %v5356_v60 = vld [vmem:[%s5813_s10 + $0x2d8] sm:$0xff]   ;;  %v5396_v63 = vld [vmem:[%s5813_s10 + $0x3e8] sm:$0xff]  }
 0xa3a   : > { %5033 = vmatprep.subr.bf16.mxu1 %v5344_v13  ;;  %5012 = vmatpush3.bf16.msra.mxu0 %v5345_v22  ;;  %v5398_v13 = vld [vmem:[%s5813_s10 + $0x3a8] sm:$0xff]   ;;  %v5399_v22 = vld [vmem:[%s5813_s10 + $0x370] sm:$0xff]  }
 0xa3b   : > { %3721 = vmatprep.mubr.bf16.mxu0 %v2487_v52  ;;  %5013 = vmatprep.subr.bf16.mxu0 %v5347_v2  ;;  %v5362_v52 = vld [vmem:[%s5813_s10 + $0x2a0] sm:$0xff]   ;;  %v5401_v2 = vld [vmem:[%s5813_s10 + $0x330] sm:$0xff]  }
 0xa3c   : > { %3681 = vmatmul.mubr.bf16.vlgmr.msra.gmra.mrb[28].mxu1 %v2484_v42  ;;  %v5357_v42 = vld [vmem:[%s5813_s10 + $0x218] sm:$0xff]  }
 0xa3d   : > { %5034 = vmatpush3.bf16.msra.mxu1 %v5346_v59  ;;  %3762 = vmatprep.mubr.bf16.mxu1 %v2489_v47  ;;  %v5363_v47 = vld [vmem:[%s5813_s10 + $0x268] sm:$0xff]   ;;  %v5400_v59 = vld [vmem:[%s5813_s10 + $0x3f0] sm:$0xff]  }
 0xa3e   : > { %5035 = vmatprep.subr.bf16.mxu1 %v5348_v34  ;;  %5014 = vmatpush3.bf16.msra.mxu0 %v5349_v31  ;;  %v5402_v34 = vld [vmem:[%s5813_s10 + $0x3b0] sm:$0xff]   ;;  %v5403_v31 = vld [vmem:[%s5813_s10 + $0x378] sm:$0xff]  }
 0xa3f   : > { %5015 = vmatprep.subr.bf16.mxu0 %v5351_v39  ;;  %v5405_v39 = vld [vmem:[%s5813_s10 + $0x338] sm:$0xff]  }
 0xa41   : > { %5036 = vmatpush3.bf16.msra.mxu1 %v5350_v0  ;;  %v5404_v0 = vld [vmem:[%s5813_s10 + $0x3f8] sm:$0xff]  }
 0xa42   : > { %5037 = vmatprep.subr.bf16.mxu1 %v5352_v33  ;;  %5016 = vmatpush3.bf16.msra.mxu0 %v5353_v1  ;;  %v5406_v33 = vld [vmem:[%s5813_s10 + $0x3b8] sm:$0xff]  }
 0xa43   : > { %5017 = vmatprep.subr.bf16.mxu0 %v5355_v55  ;;  %v4663_v55 = vld [vmem:[%s6858_s24] ss:$0 sm:$0xff] }
 0xa45   : > { %5038 = vmatpush3.bf16.msra.mxu1 %v5354_v4 }
 0xa46   : > { %5039 = vmatprep.subr.bf16.mxu1 %v5356_v60  ;;  %5018 = vmatpush3.bf16.msra.mxu0 %v5357_v42 }
 0xa47   : > { %5019 = vmatprep.subr.bf16.mxu0 %v5359_v38 }
 0xa49   : > { %5040 = vmatpush3.bf16.msra.mxu1 %v5358_v46 }
 0xa4a   : > { %5041 = vmatprep.subr.bf16.mxu1 %v5360_v7  ;;  %5020 = vmatpush3.bf16.msra.mxu0 %v5361_v11 }
 0xa4b   : > { %5021 = vmatprep.subr.bf16.mxu0 %v5363_v47 }
 0xa4d   : > { %5042 = vmatpush3.bf16.msra.mxu1 %v5362_v52 }
 0xa4e   : > { %5043 = vmatprep.subr.bf16.mxu1 %v5364_v16  ;;  %5022 = vmatpush3.bf16.msra.mxu0 %v5365_v9 }
 0xa4f   : > { %5023 = vmatprep.subr.bf16.mxu0 %v5367_v8 }
 0xa51   : > { %5044 = vmatpush3.bf16.msra.mxu1 %v5366_v6 }
 0xa52   : > { %5045 = vmatprep.subr.bf16.mxu1 %v5368_v14  ;;  %5024 = vmatpush3.bf16.msra.mxu0 %v5369_v44 }
 0xa53   : > { %5025 = vmatprep.subr.bf16.mxu0 %v5371_v29 }
 0xa55   : > { %5046 = vmatpush3.bf16.msra.mxu1 %v5370_v28 }
 0xa56   : > { %5047 = vmatprep.subr.bf16.mxu1 %v5372_v3  ;;  %5026 = vmatpush3.bf16.msra.mxu0 %v5373_v45 }
 0xa57   : > { %5055 = vmatprep.subr.bf16.mxu0 %v5375_v61 }
 0xa59   : > { %5048 = vmatpush3.bf16.msra.mxu1 %v5374_v51  ;;  %3722 = vmatmul.mubr.bf16.vlgmr.msra.gmra.mrb[32].mxu0 %v2486_v49  ;;  %v5388_v49 = vld [vmem:[%s5813_s10 + $0x3d8] sm:$0xff]  }
 0xa5a   : > { %5077 = vmatprep.subr.bf16.mxu1 %v5376_v62  ;;  %5056 = vmatpush3.bf16.msra.mxu0 %v5377_v10 }
 0xa5b   : > { %3803 = vmatprep.mubr.bf16.mxu0 %v2491_v25  ;;  %5057 = vmatprep.subr.bf16.mxu0 %v5379_v15  ;;  %v5394_v25 = vld [vmem:[%s5813_s10 + $0x3a0] sm:$0xff]  }
 0xa5c   : > { %3763 = vmatmul.mubr.bf16.vlgmr.msra.gmra.mrb[32].mxu1 %v2488_v36  ;;  %v5389_v36 = vld [vmem:[%s5813_s10 + $0x318] sm:$0xff]  }
 0xa5d   : > { %5078 = vmatpush3.bf16.msra.mxu1 %v5378_v40  ;;  %3844 = vmatprep.mubr.bf16.mxu1 %v2493_v48  ;;  %v5395_v48 = vld [vmem:[%s5813_s10 + $0x368] sm:$0xff]   ;;  %s5607_s10 = smov (!%p4792_p5), 96  }
 0xa5e   : > { %5079 = vmatprep.subr.bf16.mxu1 %v5380_v5  ;;  %5058 = vmatpush3.bf16.msra.mxu0 %v5381_v56 }
 0xa5f   : > { %5059 = vmatprep.subr.bf16.mxu0 %v5383_v19 }
 0xa61   : > { %5080 = vmatpush3.bf16.msra.mxu1 %v5382_v26 }
 0xa62   : > { %5081 = vmatprep.subr.bf16.mxu1 %v5384_v20  ;;  %5060 = vmatpush3.bf16.msra.mxu0 %v5385_v23 }
 0xa63   : > { %5061 = vmatprep.subr.bf16.mxu0 %v5387_v53 }
 0xa65   : > { %5082 = vmatpush3.bf16.msra.mxu1 %v5386_v58 }
 0xa66   : > { %5083 = vmatprep.subr.bf16.mxu1 %v5388_v49  ;;  %5062 = vmatpush3.bf16.msra.mxu0 %v5389_v36 }
 0xa67   : > { %5063 = vmatprep.subr.bf16.mxu0 %v5391_v17 }
 0xa69   : > { %5084 = vmatpush3.bf16.msra.mxu1 %v5390_v35 }
 0xa6a   : > { %5085 = vmatprep.subr.bf16.mxu1 %v5392_v54  ;;  %5064 = vmatpush3.bf16.msra.mxu0 %v5393_v57 }
 0xa6b   : > { %5065 = vmatprep.subr.bf16.mxu0 %v5395_v48 }
 0xa6d   : > { %5086 = vmatpush3.bf16.msra.mxu1 %v5394_v25 }
 0xa6e   : > { %5087 = vmatprep.subr.bf16.mxu1 %v5396_v63  ;;  %5066 = vmatpush3.bf16.msra.mxu0 %v5397_v41 }
 0xa6f   : > { %5067 = vmatprep.subr.bf16.mxu0 %v5399_v22 }
 0xa71   : > { %5088 = vmatpush3.bf16.msra.mxu1 %v5398_v13 }
 0xa72   : > { %5089 = vmatprep.subr.bf16.mxu1 %v5400_v59  ;;  %5068 = vmatpush3.bf16.msra.mxu0 %v5401_v2 }
 0xa73   : > { %5069 = vmatprep.subr.bf16.mxu0 %v5403_v31 }
 0xa75   : > { %5090 = vmatpush3.bf16.msra.mxu1 %v5402_v34 }
 0xa76   : > { %5091 = vmatprep.subr.bf16.mxu1 %v5404_v0  ;;  %5070 = vmatpush3.bf16.msra.mxu0 %v5405_v39 }
 0xa79   : > { %5092 = vmatpush3.bf16.msra.mxu1 %v5406_v33  ;;  %3804 = vmatmul.mubr.bf16.vlgmr.msra.gmra.mrb[36].mxu0 %v2490_v37 }
 0xa7c   : > { %3845 = vmatmul.mubr.bf16.vlgmr.msra.gmra.mrb[36].mxu1 %v2492_v50 }
 0xaec   : > { %v4939_v1 = vpop.f32.mrb[24].mxu0 }
 0xaed   : > { %v4940_v60 = vpop.f32.mrb[25].mxu0 }
 0xaee   : > { %v4941_v42 = vadd.f32 %v4940_v60, %v4939_v1  ;;  %v4942_v38 = vpop.f32.mrb[26].mxu0 }
 0xaef   : > { %v4961_v4 = vpop.f32.mrb[24].mxu1  ;;  %v4943_v52 = vpop.f32.mrb[27].mxu0 }
 0xaf0   : > { %v4962_v46 = vpop.f32.mrb[25].mxu1  ;;  %v3560_v27 = vadd.f32 %v4941_v42, %v4663_v55  ;;  %v4944_v12 = vadd.f32 %v4943_v52, %v4942_v38 }
 0xaf1   : > { %v4963_v7 = vadd.f32 %v4962_v46, %v4961_v4  ;;  %v4964_v11 = vpop.f32.mrb[26].mxu1 }
 0xaf2   : > { %v4965_v37 = vpop.f32.mrb[27].mxu1  ;;  %v3563_v18 = vadd.f32 %v4944_v12, %v4663_v55 }
 0xaf3   : > { %v4966_v47 = vadd.f32 %v4965_v37, %v4964_v11  ;;  %v3601_v43 = vadd.f32 %v4963_v7, %v3560_v27 }
 0xaf5   : > { %v3604_v50 = vadd.f32 %v4966_v47, %v3563_v18 }
 0xb0c   : > { %v4983_v16 = vpop.f32.mrb[28].mxu0 }
 0xb0d   : > { %v4984_v6 = vpop.f32.mrb[29].mxu0 }
 0xb0e   : > { %v4985_v8 = vadd.f32 %v4984_v6, %v4983_v16  ;;  %v4986_v44 = vpop.f32.mrb[30].mxu0  ;;  %v5487_v16 = vld [vmem:[%s6803_s20 + $0x4] ss:$8 sps:$4 sm:$0xff] (!%p4792_p5)   ;;  %v5490_v6 = vld [vmem:[%s6803_s20 + $0x14] ss:$8 sps:$4 sm:$0xff] (!%p4792_p5)  }
 0xb0f   : > { %v5005_v9 = vpop.f32.mrb[28].mxu1  ;;  %v4987_v3 = vpop.f32.mrb[31].mxu0  ;;  %4077 = vmatprep.subr.bf16.mxu0 (!%p4792_p5), %v5487_v16 }
 0xb10   : > { %v5006_v14 = vpop.f32.mrb[29].mxu1  ;;  %v3642_v45 = vadd.f32 %v4985_v8, %v3601_v43  ;;  %v4988_v51 = vadd.f32 %v4987_v3, %v4986_v44  ;;  %v5492_v8 = vld [vmem:[%s6803_s20 + $0x10] ss:$8 sps:$4 sm:$0xff] (!%p4792_p5)   ;;  %v5495_v44 = vld [vmem:[%s6803_s20 + $0x20] ss:$8 sps:$4 sm:$0xff] (!%p4792_p5)  }
 0xb11   : > { %v5007_v28 = vadd.f32 %v5006_v14, %v5005_v9  ;;  %v5008_v29 = vpop.f32.mrb[30].mxu1  ;;  %v5489_v9 = vld [vmem:[%s6803_s20] ss:$8 sps:$4 sm:$0xff] (!%p4792_p5)   ;;  %v5493_v14 = vld [vmem:[%s6803_s20 + $0x24] ss:$8 sps:$4 sm:$0xff] (!%p4792_p5)  }
 0xb12   : > { %v5009_v61 = vpop.f32.mrb[31].mxu1  ;;  %v3645_v40 = vadd.f32 %v4988_v51, %v3604_v50  ;;  %4078 = vmatpush1.bf16.msra.mxu0 (!%p4792_p5), %v5489_v9  ;;  %v5499_v3 = vld [vmem:[%s6803_s20 + $0x44] ss:$8 sps:$4 sm:$0xff] (!%p4792_p5)   ;;  %v5502_v51 = vld [vmem:[%s6803_s20 + $0x54] ss:$8 sps:$4 sm:$0xff] (!%p4792_p5)  }
 0xb13   : > { %v5010_v62 = vadd.f32 %v5009_v61, %v5008_v29  ;;  %v3683_v10 = vadd.f32 %v5007_v28, %v3642_v45  ;;  %4079 = vmatprep.subr.bf16.mxu0 (!%p4792_p5), %v5490_v6  ;;  %v5496_v28 = vld [vmem:[%s6803_s20 + $0x34] ss:$8 sps:$4 sm:$0xff] (!%p4792_p5)   ;;  %v5498_v29 = vld [vmem:[%s6803_s20 + $0x30] ss:$8 sps:$4 sm:$0xff] (!%p4792_p5)   ;;  %v5501_v45 = vld [vmem:[%s6803_s20 + $0x40] ss:$8 sps:$4 sm:$0xff] (!%p4792_p5)  }
 0xb14   : > { %v5504_v61 = vld [vmem:[%s6803_s20 + $0x50] ss:$8 sps:$4 sm:$0xff] (!%p4792_p5)  }
 0xb15   : > { %v3686_v15 = vadd.f32 %v5010_v62, %v3645_v40  ;;  %v5505_v62 = vld [vmem:[%s6803_s20 + $0x64] ss:$8 sps:$4 sm:$0xff] (!%p4792_p5)  }
 0xb16   : > { %4080 = vmatpush1.bf16.msra.mxu0 (!%p4792_p5), %v5492_v8 }
 0xb17   : > { %4081 = vmatprep.subr.bf16.mxu0 (!%p4792_p5), %v5493_v14 }
 0xb1a   : > { %4082 = vmatpush1.bf16.msra.mxu0 (!%p4792_p5), %v5495_v44 }
 0xb1b   : > { %4083 = vmatprep.subr.bf16.mxu0 (!%p4792_p5), %v5496_v28 }
 0xb1e   : > { %4084 = vmatpush1.bf16.msra.mxu0 (!%p4792_p5), %v5498_v29 }
 0xb1f   : > { %4085 = vmatprep.subr.bf16.mxu0 (!%p4792_p5), %v5499_v3 }
 0xb22   : > { %4086 = vmatpush1.bf16.msra.mxu0 (!%p4792_p5), %v5501_v45  ;;  %v5543_v45 = vld [vmem:[%s6859_s25 + $0x80] ss:$8 sps:$4 sm:$0xff] (!%p4792_p5)  }
 0xb23   : > { %4087 = vmatprep.subr.bf16.mxu0 (!%p4792_p5), %v5502_v51  ;;  %v5544_v51 = vld [vmem:[%s6859_s25 + $0x94] ss:$8 sps:$4 sm:$0xff] (!%p4792_p5)  }
 0xb26   : > { %4088 = vmatpush1.bf16.msra.mxu0 (!%p4792_p5), %v5504_v61  ;;  %v5546_v61 = vld [vmem:[%s6859_s25 + $0x90] ss:$8 sps:$4 sm:$0xff] (!%p4792_p5)  }
 0xb27   : > { %4089 = vmatprep.subr.bf16.mxu0 (!%p4792_p5), %v5505_v62  ;;  %v5547_v62 = vld [vmem:[%s6860_s6] sm:$0xff] (!%p4792_p5)  }
 0xb2c   : > { %v5027_v5 = vpop.f32.mrb[32].mxu0 }
 0xb2d   : > { %v5028_v26 = vpop.f32.mrb[33].mxu0 }
 0xb2e   : > { %v5029_v19 = vadd.f32 %v5028_v26, %v5027_v5  ;;  %v5030_v23 = vpop.f32.mrb[34].mxu0 }
 0xb2f   : > { %v5049_v56 = vpop.f32.mrb[32].mxu1  ;;  %v5031_v49 = vpop.f32.mrb[35].mxu0 }
 0xb30   : > { %v5050_v20 = vpop.f32.mrb[33].mxu1  ;;  %v3724_v36 = vadd.f32 %v5029_v19, %v3683_v10  ;;  %v5032_v35 = vadd.f32 %v5031_v49, %v5030_v23  ;;  %v5507_v10 = vld [vmem:[%s6803_s20 + $0x60] ss:$8 sps:$4 sm:$0xff] (!%p4792_p5)   ;;  %v5510_v23 = vld [vmem:[%s6803_s20 + $0x70] ss:$8 sps:$4 sm:$0xff] (!%p4792_p5)  }
 0xb31   : > { %v5051_v58 = vadd.f32 %v5050_v20, %v5049_v56  ;;  %v5052_v53 = vpop.f32.mrb[34].mxu1  ;;  %4090 = vmatpush1.bf16.msra.mxu0 (!%p4792_p5), %v5507_v10  ;;  %v5508_v20 = vld [vmem:[%s6803_s20 + $0x74] ss:$8 sps:$4 sm:$0xff] (!%p4792_p5)   ;;  %v4793_v49 = vld [vmem:[%s6801_s18] ss:$0 sm:$0xff] (!%p4792_p5)  ;;  %v5608_v10 = vmov (!%p4792_p5), 0  }
 0xb32   : > { %v5053_v17 = vpop.f32.mrb[35].mxu1  ;;  %v3727_v25 = vadd.f32 %v5032_v35, %v3686_v15  ;;  %4091 = vmatprep.subr.bf16.mxu0 (!%p4792_p5), %v5508_v20  ;;  %v5554_v20 = vld [vmem:[%s6860_s6 + $0x38] sm:$0xff] (!%p4792_p5)  }
 0xb33   : > { %v5054_v54 = vadd.f32 %v5053_v17, %v5052_v53  ;;  %v3765_v57 = vadd.f32 %v5051_v58, %v3724_v36  ;;  %v5511_v58 = vld [vmem:[%s6803_s20 + $0x84] ss:$8 sps:$4 sm:$0xff] (!%p4792_p5)   ;;  %v5513_v36 = vld [vmem:[%s6803_s20 + $0x80] ss:$8 sps:$4 sm:$0xff] (!%p4792_p5)  }
 0xb34   : > { %v4794_v17 = vld [vmem:[%s6802_s19] ss:$0 sm:$0xff] (!%p4792_p5) }
 0xb35   : > { %v3768_v48 = vadd.f32 %v5054_v54, %v3727_v25  ;;  %4092 = vmatpush1.bf16.msra.mxu0 (!%p4792_p5), %v5510_v23  ;;  %v3962_v23 = vld [vmem:[%s6861_s7] sm:$0x3] (!%p4792_p5) }
 0xb36   : > { %4093 = vmatprep.subr.bf16.mxu0 (!%p4792_p5), %v5511_v58  ;;  %v3967_v58 = vrot.slane (!%p4792_p5), %v3962_v23, %v6200_v30 }
 0xb39   : > { %4094 = vmatpush1.bf16.msra.mxu0 (!%p4792_p5), %v5513_v36 }
 0xb4c   : > { %v5071_v63 = vpop.f32.mrb[36].mxu0 }
 0xb4d   : > { %v5072_v13 = vpop.f32.mrb[37].mxu0 }
 0xb4e   : > { %v5073_v22 = vadd.f32 %v5072_v13, %v5071_v63  ;;  %v5074_v2 = vpop.f32.mrb[38].mxu0 }
 0xb4f   : > { %v5093_v41 = vpop.f32.mrb[36].mxu1  ;;  %v5075_v0 = vpop.f32.mrb[39].mxu0 }
 0xb50   : > { %v5094_v59 = vpop.f32.mrb[37].mxu1  ;;  %v3806_v39 = vadd.f32 %v5073_v22, %v3765_v57  ;;  %v5076_v33 = vadd.f32 %v5075_v0, %v5074_v2  ;;  %v5514_v57 = vld [vmem:[%s6803_s20 + $0x94] ss:$8 sps:$4 sm:$0xff] (!%p4792_p5)   ;;  %v5517_v2 = vld [vmem:[%s6859_s25 + $0x4] ss:$8 sps:$4 sm:$0xff] (!%p4792_p5)  }
 0xb51   : > { %v5095_v34 = vadd.f32 %v5094_v59, %v5093_v41  ;;  %v5096_v31 = vpop.f32.mrb[38].mxu1  ;;  %4095 = vmatprep.subr.bf16.mxu0 (!%p4792_p5), %v5514_v57  ;;  %4255 = vmatprep.subr.bf16.mxu1 (!%p4792_p5), %v5517_v2 }
 0xb52   : > { %v5097_v1 = vpop.f32.mrb[39].mxu1  ;;  %v3809_v60 = vadd.f32 %v5076_v33, %v3768_v48  ;;  %v5516_v48 = vld [vmem:[%s6803_s20 + $0x90] ss:$8 sps:$4 sm:$0xff] (!%p4792_p5)  }
 0xb53   : > { %v5098_v4 = vadd.f32 %v5097_v1, %v5096_v31  ;;  %v3847_v55 = vadd.f32 %v5095_v34, %v3806_v39  ;;  %3860 = sbr.rel (%p4792_p5) target bundleno = 3996 (0xf9c), region = 132  ;;  %4096 = vmatpush1.bf16.msra.mxu0 (!%p4792_p5), %v5516_v48  ;;  %v5519_v34 = vld [vmem:[%s6859_s25] ss:$8 sps:$4 sm:$0xff] (!%p4792_p5)   ;;  %v5520_v39 = vld [vmem:[%s6859_s25 + $0x14] ss:$8 sps:$4 sm:$0xff] (!%p4792_p5)  }
 0xb54   : > { %4256 = vmatpush1.bf16.msra.mxu1 (!%p4792_p5), %v5519_v34  ;;  %4388 = vmatprep.subr.bf16.mxu0 (!%p4792_p5), %v5608_v10 }
 0xb55   : > { %v3853_v42 = vadd.f32 %v3847_v55, %v6082_v21  ;;  %v3850_v46 = vadd.f32 %v5098_v4, %v3809_v60  ;;  %v5522_v4 = vld [vmem:[%s6859_s25 + $0x10] ss:$8 sps:$4 sm:$0xff] (!%p4792_p5)   ;;  %4257 = vmatprep.subr.bf16.mxu1 (!%p4792_p5), %v5520_v39  ;;  %v5523_v60 = vld [vmem:[%s6859_s25 + $0x24] ss:$8 sps:$4 sm:$0xff] (!%p4792_p5)  }
 0xb57   : > { %3855 = vst.msk [vmem:[#allocation2] sm:$0xff] %vm1079_vm2, %v3853_v42  ;;  %v3854_v38 = vadd.f32 %v3850_v46, %v6085_v24  ;;  %v3863_v7 = vsel (!%p4792_p5), %vm1079_vm2, %v3853_v42, 0.0  ;;  %v5525_v46 = vld [vmem:[%s6859_s25 + $0x20] ss:$8 sps:$4 sm:$0xff] (!%p4792_p5)  }
 0xb58   : > { %3864 = vadd.xlane.f32.xlu0 (!%p4792_p5), %v3863_v7  ;;  %4258 = vmatpush1.bf16.msra.mxu1 (!%p4792_p5), %v5522_v4  ;;  %v5528_v7 = vld [vmem:[%s6859_s25 + $0x30] ss:$8 sps:$4 sm:$0xff] (!%p4792_p5)  }
 0xb59   : > { %3856 = vst.msk [vmem:[#allocation2 + $0x8] sm:$0x3] %vm1083_vm3, %v3854_v38  ;;  %v3866_v11 = vsel (!%p4792_p5), %vm1083_vm3, %v3854_v38, 0.0  ;;  %4259 = vmatprep.subr.bf16.mxu1 (!%p4792_p5), %v5523_v60 }
 0xb5c   : > { %3867 = vadd.xlane.f32.xlu0 %v3866_v11  ;;  %4260 = vmatpush1.bf16.msra.mxu1 %v5525_v46  ;;  %v5529_v11 = vld [vmem:[%s6859_s25 + $0x44] ss:$8 sps:$4 sm:$0xff]  }
 0xbe5   : > { %v3865_v52 = vpop.xlane.xlu0 %3864 }
 0xbe6   : > { %v3869_v27 = vmul.f32 0.03125, %v3865_v52  ;;  %v5531_v52 = vld [vmem:[%s6859_s25 + $0x40] ss:$8 sps:$4 sm:$0xff]  }
 0xbe8   : > { %v3871_v12 = vsub.f32 %v3853_v42, %v3869_v27  ;;  %v5532_v27 = vld [vmem:[%s6859_s25 + $0x54] ss:$8 sps:$4 sm:$0xff]  }
 0xbe9   : > { %v3868_v21 = vpop.xlane.xlu0 %3867 }
 0xbea   : > { %v3870_v37 = vmul.f32 0.03125, %v3868_v21  ;;  %v3873_v47 = vmul.f32 %v3871_v12, %v3871_v12  ;;  %v5535_v21 = vld [vmem:[%s6859_s25 + $0x64] ss:$8 sps:$4 sm:$0xff]  }
 0xbec   : > { %v3872_v43 = vsub.f32 %v3854_v38, %v3870_v37  ;;  %v3875_v24 = vsel %vm1079_vm2, %v3873_v47, 0.0  ;;  %v5526_v38 = vld [vmem:[%s6859_s25 + $0x34] ss:$8 sps:$4 sm:$0xff]   ;;  %v5537_v37 = vld [vmem:[%s6859_s25 + $0x60] ss:$8 sps:$4 sm:$0xff]  }
 0xbed   : > { %3876 = vadd.xlane.f32.xlu1 %v3875_v24  ;;  %4261 = vmatprep.subr.bf16.mxu1 %v5526_v38  ;;  %v5538_v47 = vld [vmem:[%s6859_s25 + $0x74] ss:$8 sps:$4 sm:$0xff]   ;;  %v5541_v24 = vld [vmem:[%s6859_s25 + $0x84] ss:$8 sps:$4 sm:$0xff]  }
 0xbee   : > { %v3874_v18 = vmul.f32 %v3872_v43, %v3872_v43  ;;  %4262 = vmatpush1.bf16.msra.mxu1 %v5528_v7 }
 0xbef   : > { %4263 = vmatprep.subr.bf16.mxu1 %v5529_v11 }
 0xbf0   : > { %v3878_v50 = vsel %vm1083_vm3, %v3874_v18, 0.0 }
 0xbf1   : > { %3879 = vadd.xlane.f32.xlu1 %v3878_v50 }
 0xbf2   : > { %4264 = vmatpush1.bf16.msra.mxu1 %v5531_v52 }
 0xbf3   : > { %4265 = vmatprep.subr.bf16.mxu1 %v5532_v27 }
 0xc7a   : > { %v3877_v40 = vpop.xlane.xlu1 %3876 }
 0xc7b   : > { %v3881_v15 = vmul.f32 0.03125, %v3877_v40  ;;  %v5548_v40 = vld [vmem:[%s6860_s6 + $0x8] sm:$0xff]  }
 0xc7d   : > { %v3883_v5 = vadd.f32 1e-05, %v3881_v15  ;;  %v5549_v15 = vld [vmem:[%s6860_s6 + $0x10] sm:$0xff]  }
 0xc7e   : > { %v3880_v56 = vpop.xlane.xlu1 %3879 }
 0xc7f   : > { %5557 = vrsqrt.f32 %v3883_v5  ;;  %v3882_v26 = vmul.f32 0.03125, %v3880_v56  ;;  %v5550_v5 = vld [vmem:[%s6860_s6 + $0x18] sm:$0xff]   ;;  %v5551_v56 = vld [vmem:[%s6860_s6 + $0x20] sm:$0xff]  }
 0xc81   : > { %v3884_v19 = vadd.f32 1e-05, %v3882_v26  ;;  %v5552_v26 = vld [vmem:[%s6860_s6 + $0x28] sm:$0xff]  }
 0xc83   : > { %5559 = vrsqrt.f32 %v3884_v19  ;;  %v5553_v19 = vld [vmem:[%s6860_s6 + $0x30] sm:$0xff]  }
 0xc89   : > { %v5558_v53 = vpop.eup %5557 }
 0xc8a   : > { %v3887_v35 = vmul.f32 %v5558_v53, %v3871_v12  ;;  %v5534_v12 = vld [vmem:[%s6859_s25 + $0x50] ss:$8 sps:$4 sm:$0xff]   ;;  %v3971_v53 = vrot.slane %v3962_v23, %v6205_v32 }
 0xc8b   : > { %4266 = vmatpush1.bf16.msra.mxu1 %v5534_v12 }
 0xc8c   : > { %v3895_v54 = vmul.f32 %v4793_v49, %v3887_v35  ;;  %4267 = vmatprep.subr.bf16.mxu1 %v5535_v21 }
 0xc8d   : > { %v5560_v25 = vpop.eup %5559 }
 0xc8e   : > { %v3903_v63 = vadd.f32 %v4794_v17, %v3895_v54  ;;  %v3888_v41 = vmul.f32 %v5560_v25, %v3872_v43  ;;  %v5540_v43 = vld [vmem:[%s6859_s25 + $0x70] ss:$8 sps:$4 sm:$0xff]  }
 0xc8f   : > { %4268 = vmatpush1.bf16.msra.mxu1 %v5537_v37 }
 0xc90   : > { %v3910_v13 = vrot.slane %v3903_v63, 2  ;;  %v3906_v22 = vrot.slane %v3903_v63, 1  ;;  %v3896_v59 = vmul.f32 %v4793_v49, %v3888_v41  ;;  %v3918_v0 = vrot.slane %v3903_v63, 4  ;;  %4269 = vmatprep.subr.bf16.mxu1 %v5538_v47  ;;  %v5556_v41 = vld [vmem:[%s6860_s6 + $0x48] sm:$0xff]  }
 0xc91   : > { %v3914_v42 = vrot.slane %v3903_v63, 3 }
 0xc92   : > { %3911 = vrot.lane.b32.xlu1 %v3910_v13, %s5605_s2  ;;  %3907 = vrot.lane.b32.xlu0 %v3906_v22, %s5606_s4  ;;  %v3904_v31 = vadd.f32 %v4794_v17, %v3896_v59  ;;  %s6862_s4 = sld [smem:[#allocation20_spill]] }
 0xc93   : > { %4270 = vmatpush1.bf16.msra.mxu1 %v5540_v43 }
 0xc94   : > { %v3926_v33 = vrot.slane %v3904_v31, 3  ;;  %v3939_v1 = vsel %vm3937_vm11, %v3918_v0, %v3904_v31  ;;  %4271 = vmatprep.subr.bf16.mxu1 %v5541_v24 }
 0xc95   : > { %v3941_v55 = vpack.c.bf16 %v3939_v1, %v3939_v1 }
 0xc96   : > { %3927 = vrot.lane.b32.xlu1 %v3926_v33, %s5607_s10 }
 0xc97   : > { %4816 = vmatprep.mubr.msk.bf16.mxu0 %vm1079_vm2, %v3941_v55  ;;  %4272 = vmatpush1.bf16.msra.mxu1 %v5543_v45  ;;  %v4838_v55 = vld [vmem:[%s6863_s1] ss:$0 sm:$0xff] }
 0xc98   : > { %4273 = vmatprep.subr.bf16.mxu1 %v5544_v51  ;;  %v4140_v13 = vld [vmem:[%s6862_s4] sm:$0x3] }
 0xc99   : > { %v4145_v22 = vrot.slane %v4140_v13, %v6200_v30  ;;  %v4149_v59 = vrot.slane %v4140_v13, %v6205_v32 }
 0xc9a   : > { %3915 = vrot.lane.b32.xlu1 %v3914_v42, %s5607_s10 }
 0xc9b   : > { %4274 = vmatpush1.bf16.msra.mxu1 %v5546_v61 }
 0xd04   : > { %v3912_v18 = vpop.permute.xlu1 %3911  ;;  %v3908_v50 = vpop.permute.xlu0 %3907 }
 0xd05   : > { %v3920_v16 = vsel %vm1079_vm2, %v3903_v63, %v3908_v50  ;;  %v5555_v63 = vld [vmem:[%s6860_s6 + $0x40] sm:$0xff]  }
 0xd06   : > { %v3922_v9 = vsel %vm3921_vm12, %v3920_v16, %v3912_v18 }
 0xd08   : > { %v3928_v6 = vpop.permute.xlu1 %3927 }
 0xd09   : > { %v3931_v8 = vsel %vm3923_vm13, %v3922_v9, %v3928_v6 }
 0xd0a   : > { %v3933_v14 = vrot.slane %v3931_v8, 4 }
 0xd0c   : > { %v3916_v44 = vpop.permute.xlu1 %3915 }
 0xd0d   : > { %v3924_v28 = vsel %vm3923_vm13, %v3922_v9, %v3916_v44 }
 0xd0e   : > { %v3938_v29 = vsel %vm3937_vm11, %v3924_v28, %v3933_v14 }
 0xd0f   : > { %v3940_v3 = vpack.c.bf16 %v3938_v29, %v3938_v29 }
 0xd11   : > { %4110 = vmatmul.mubr.bf16.vlgmr.msra.gmra.mrb[0].mxu0 %v3940_v3 }
 0xd12   : > { %4389 = vmatpush1.bf16.msra.mxu0 %v5547_v62 }
 0xd13   : > { %4390 = vmatprep.subr.bf16.mxu0 %v5608_v10 }
 0xd16   : > { %4391 = vmatpush1.bf16.msra.mxu0 %v5548_v40 }
 0xd17   : > { %4392 = vmatprep.subr.bf16.mxu0 %v5608_v10 }
 0xd1a   : > { %4393 = vmatpush1.bf16.msra.mxu0 %v5549_v15 }
 0xd1b   : > { %4394 = vmatprep.subr.bf16.mxu0 %v5608_v10 }
 0xd1e   : > { %4395 = vmatpush1.bf16.msra.mxu0 %v5550_v5 }
 0xd1f   : > { %4396 = vmatprep.subr.bf16.mxu0 %v5608_v10 }
 0xd22   : > { %4397 = vmatpush1.bf16.msra.mxu0 %v5551_v56 }
 0xd23   : > { %4398 = vmatprep.subr.bf16.mxu0 %v5608_v10 }
 0xd26   : > { %4399 = vmatpush1.bf16.msra.mxu0 %v5552_v26 }
 0xd27   : > { %4400 = vmatprep.subr.bf16.mxu0 %v5608_v10 }
 0xd2a   : > { %4401 = vmatpush1.bf16.msra.mxu0 %v5553_v19 }
 0xd2b   : > { %4402 = vmatprep.subr.bf16.mxu0 %v5608_v10 }
 0xd2e   : > { %4403 = vmatpush1.bf16.msra.mxu0 %v5554_v20 }
 0xd2f   : > { %4404 = vmatprep.subr.bf16.mxu0 %v5608_v10 }
 0xd32   : > { %4405 = vmatpush1.bf16.msra.mxu0 %v5555_v63 }
 0xd33   : > { %4406 = vmatprep.subr.bf16.mxu0 %v5608_v10 }
 0xd36   : > { %4407 = vmatpush1.bf16.msra.mxu0 %v5556_v41 }
 0xde4   : > { %v4111_v49 = vpop.f32.mrb[0].mxu0 }
 0xde5   : > { %v4112_v36 = vadd.f32 %v4111_v49, %v3967_v58  ;;  %v4113_v35 = vpop.f32.mrb[1].mxu0 }
 0xde6   : > { %v4115_v17 = vpop.f32.mrb[2].mxu0  ;;  %v4114_v54 = vadd.f32 %v4113_v35, %v3971_v53 }
 0xde7   : > { %v4116_v57 = vpop.f32.mrb[3].mxu0  ;;  %v4118_v48 = vpack.c.bf16 %v4112_v36, %v4112_v36 }
 0xde8   : > { %v4119_v25 = vpack.c.bf16 %v4114_v54, %v4114_v54 }
 0xdea   : > { %4837 = vmatprep.mubr.msk.bf16.mxu1 %vm1079_vm2, %v4119_v25 }
 0xdeb   : > { %4288 = vmatmul.mubr.bf16.vlgmr.msra.gmra.mrb[0].mxu1 %v4118_v48 }
 0xebe   : > { %v4289_v2 = vpop.f32.mrb[0].mxu1 }
 0xebf   : > { %v4290_v34 = vadd.f32 %v4289_v2, %v4145_v22  ;;  %v4291_v31 = vpop.f32.mrb[1].mxu1 }
 0xec0   : > { %v4292_v0 = vadd.f32 %v4291_v31, %v4149_v59  ;;  %v4293_v39 = vpop.f32.mrb[2].mxu1 }
 0xec1   : > { %v4294_v33 = vpop.f32.mrb[3].mxu1  ;;  %v4296_v4 = vpack.c.bf16 %v4290_v34, %v4290_v34 }
 0xec2   : > { %v4297_v1 = vpack.c.bf16 %v4292_v0, %v4292_v0 }
 0xec4   : > { %4849 = vmatprep.mubr.msk.bf16.mxu0 %vm1079_vm2, %v4297_v1 }
 0xec5   : > { %4421 = vmatmul.mubr.bf16.vlgmr.msra.gmra.mrb[4].mxu0 %v4296_v4 }
 0xf98   : > { %v4422_v60 = vpop.f32.mrb[4].mxu0 }
 0xf99   : > { %v4423_v42 = vadd.f32 %v4838_v55, %v4422_v60  ;;  %v4424_v30 = vpop.f32.mrb[5].mxu0 }
 0xf9a   : > { %v4425_v46 = vpop.f32.mrb[6].mxu0 }
 0xf9b   : > { %4428 = vst [vmem:[#allocation3] sm:$0x3] %v4423_v42  ;;  %v4426_v32 = vpop.f32.mrb[7].mxu0 }
 0xf9c PF: > { %p5234_p6 = scmp.eq.s32.totalorder %s5751_s3, 1  ;;  %s5609_s24 = smov [#allocation3]  }
 0xf9d   : > { %s4436_s7 = sshll.u32 %s5609_s24, 4  ;;  %s4437_s7 = int_to_ptr.vmem [resolvable:$true] %s4436_s7 }
 0xf9e   : > { %s5561_s10 = scalar_lea.vmem %s4437_s7, 32  ;;  %p5568_p10 = scmp.lt.s32.totalorder %s4437_s7, %s4437_s7 }
 0xf9f   : > { %p5562_p7 = scmp.ne.s32.totalorder %s4437_s7, %s5561_s10  ;;  %p5569_p11 = scmp.lt.s32.totalorder %s5561_s10, %s5561_s10 }
 0xfa1   : > { %p5563_p8 = pnand %p5562_p7, %p5234_p6  ;;  %p5570_p12 = por %p5569_p11, %p5568_p10 }
 0xfa3   : > { %p5564_p9 = pneg %p5563_p8 }
 0xfa5   : > { %p5571_p13 = pnand %p5570_p12, %p5564_p9 }
 0xfa7   : > { %5574 = shalt.err (!%p5571_p13)
}
 0xfa8   : > { %s6864_s21 = sld [smem:[#allocation23_spill]] }
 0xfae   : > { %s5575_s22 = scalar_lea.hbm %s6864_s21, 32 }
 0xfaf   : > { %p5576_p0 = scmp.ne.s32.totalorder %s6864_s21, %s5575_s22  ;;  %p5581_p3 = scmp.lt.u32.totalorder %s5575_s22, %s6864_s21 }
 0xfb1   : > { %p5577_p1 = pnand %p5576_p0, %p5234_p6 }
 0xfb3   : > { %p5578_p2 = pneg %p5577_p1 }
 0xfb5   : > { %p5583_p4 = pnand %p5581_p3, %p5578_p2 }
 0xfb7   : > { %5586 = shalt.err (!%p5583_p4)
}
 0xfb8   : > { %5231 = dma.vmem_to_hbm [thread:$0]  (%p5234_p6), %s4437_s7, 32, %s6864_s21, [#allocation4]  }
 0xfb9   : > { %5592 = dma.done.wait (%p5234_p6), [#allocation4], 32  }
 0xfba   : > { %5594 = vsyncadd (%p5234_p6), [#allocation4], 4294967264 }
 0xfbb PF: > { %s6865_s10 = sld [smem:[#allocation6_spill]] }
 0xfc1   : > { %s37_s27 = sadd.s32 1, %s6865_s10  }
 0xfc2   : > { %p34_p5 = scmp.ge.s32.totalorder %s37_s27, 4  }
 0xfc4   :  { %36 = sbr.rel (!%p34_p5) target bundleno = 19 (0x13), region = 192 }
 0xfcb   :  { %4449 = vsyncpa [#allocation4], 1 }
 0xfcc   :  { %4451 = vsyncpa [#allocation4 + $0x1], 1 }

</bundles_post_ra>
